<compile_context>
chip_gen: v7x
topology: tpu7x:2x2x1
jax: 0.10.0
libtpu: 0.0.40
codegen_flags: <defaults>
</compile_context>

<pallas_src>
import math

import jax
import jax.numpy as jnp
from jax.experimental import pallas as pl
from jax.experimental.pallas import tpu as pltpu

# ---------------- small config (scaled-down from hid=512, pf=2048, heads=8) ----
HID = 32            # hid_dim
PF = 64             # pf_dim
NH = 4              # n_heads
HD = HID // NH      # head dim
NLAYERS = 2         # n_layers
VOCAB = 100         # input_dim (vocab size)
MAXPOS = 1000       # pos embedding table size
EPS = 1e-5          # nn.LayerNorm default eps

EMB_SCALE = math.sqrt(float(HID))            # tok_embedding * sqrt(hid_dim)
INV_ATTN_SCALE = 1.0 / math.sqrt(float(HD))  # fold 1/sqrt(head_dim) into q

PARAM_ORDER = ('wq', 'bq', 'wk', 'bk', 'wv', 'bv', 'wo', 'bo',
               'gamma', 'beta', 'w1', 'b1', 'w2', 'b2')


def encoder_kernel(tok_ref, pos_ref, bias_ref,
                   wq_ref, bq_ref, wk_ref, bk_ref, wv_ref, bv_ref,
                   wo_ref, bo_ref, gamma_ref, beta_ref,
                   w1_ref, b1_ref, w2_ref, b2_ref,
                   out_ref):
    """Fused encoder forward for ONE batch element (grid axis = batch).

    Activations are (S, HID) and stay resident in VMEM for the whole pass.
    """
    S = tok_ref.shape[0]

    # ---- embedding combine: tok*sqrt(H) + pos (dropout = identity) -----------
    x = tok_ref[...].astype(jnp.float32) * jnp.float32(EMB_SCALE) + pos_ref[...]  # (S,H) f32
    bias = bias_ref[...]                       # (1,1,S) additive mask, broadcasts over (NH,S,S)

    # TODO(synk): at real sizes (hid=512, pf=2048, long S) move the layer loop
    # to a grid axis / fori_loop, tile rows of B*S, flash-tile the attention
    # (no SxS energy materialized) and set vmem_limit_bytes for v7x's 64 MiB.
    for l in range(NLAYERS):                   # static unroll (L=2, tiny)
        wq = wq_ref[l]; wk = wk_ref[l]; wv = wv_ref[l]; wo = wo_ref[l]   # (H,H) bf16
        bq = bq_ref[l]; bk = bk_ref[l]; bv = bv_ref[l]; bo = bo_ref[l]   # (1,H) f32
        gamma = gamma_ref[l]; beta = beta_ref[l]                         # (1,H) f32

        # ---- self attention (batched over heads, no per-head loop) ----------
        x_bf = x.astype(jnp.bfloat16)
        # cast q/k/v to bf16 exactly ONCE; only bf16 copies stay live below
        q = ((jnp.dot(x_bf, wq, preferred_element_type=jnp.float32) + bq)
             * jnp.float32(INV_ATTN_SCALE)).astype(jnp.bfloat16)          # (S,H)
        k = (jnp.dot(x_bf, wk, preferred_element_type=jnp.float32) + bk
             ).astype(jnp.bfloat16)
        v = (jnp.dot(x_bf, wv, preferred_element_type=jnp.float32) + bv
             ).astype(jnp.bfloat16)

        # one relayout per tensor to head-batched (NH, S, HD)
        qh = jnp.transpose(q.reshape(S, NH, HD), (1, 0, 2))
        kh = jnp.transpose(k.reshape(S, NH, HD), (1, 0, 2))
        vh = jnp.transpose(v.reshape(S, NH, HD), (1, 0, 2))

        # single batched energy + softmax (f32 elementwise)
        energy = jnp.einsum('hqd,hkd->hqk', qh, kh,
                            preferred_element_type=jnp.float32) + bias    # (NH,S,S)
        m = jnp.max(energy, axis=-1, keepdims=True)
        e = jnp.exp(energy - m)
        p = e * pl.reciprocal(jnp.sum(e, axis=-1, keepdims=True), approx=True)

        # single batched context, then ONE head-merge relayout + ONE Wo matmul
        ctx = jnp.einsum('hqk,hkd->hqd', p.astype(jnp.bfloat16), vh,
                         preferred_element_type=jnp.float32)              # (NH,S,HD)
        ctx_m = jnp.transpose(ctx, (1, 0, 2)).reshape(S, HID)
        attn_out = jnp.dot(ctx_m.astype(jnp.bfloat16), wo,
                           preferred_element_type=jnp.float32) + bo       # (S,H)

        # ---- shared layernorm (one nn.LayerNorm per layer, applied twice) ----
        def layer_norm(y):
            mu = jnp.mean(y, axis=-1, keepdims=True)
            var = jnp.mean((y - mu) ** 2, axis=-1, keepdims=True)
            return (y - mu) * jax.lax.rsqrt(var + jnp.float32(EPS)) * gamma + beta

        x1 = layer_norm(x + attn_out)

        # ---- positionwise feedforward (Conv1d k=1 == pointwise linear) -------
        h1 = jnp.maximum(
            jnp.dot(x1.astype(jnp.bfloat16), w1_ref[l],
                    preferred_element_type=jnp.float32) + b1_ref[l], 0.0)  # (S,PF)
        ff = jnp.dot(h1.astype(jnp.bfloat16), w2_ref[l],
                     preferred_element_type=jnp.float32) + b2_ref[l]       # (S,H)
        x = layer_norm(x1 + ff)

    # lane-major (S, HID) store; wrapper reshapes to (B, S, HID)
    out_ref[...] = x


def encoder_forward(src_tokens, src_mask, params):
    """src_tokens: [B,S] int32; src_mask: [B,S] (1 = keep, 0 = pad)."""
    B, S = src_tokens.shape
    # Embedding gathers stay as JAX glue (data-dependent gather); pass the
    # activation to the kernel as bf16 to halve the HBM->VMEM activation DMA.
    tok = params['tok_emb'][src_tokens].astype(jnp.bfloat16).reshape(B * S, HID)
    pos = params['pos_emb'][:S].astype(jnp.float32)                              # (S, H)
    # Additive mask bias: 0 where keep, -1e10 where pad; broadcast-ready (B,1,S).
    bias = ((1.0 - src_mask.astype(jnp.float32)) * jnp.float32(-1e10))[:, None, :]

    weights = [params[n] for n in PARAM_ORDER]

    # ---- advisory cost estimate ------------------------------------------------
    BS = B * S
    flops = NLAYERS * (8 * BS * HID * HID          # q,k,v,o projections
                       + 4 * B * NH * S * S * HD   # energy + context
                       + 4 * BS * HID * PF)        # FFN
    transcendentals = NLAYERS * (B * NH * S * S + B * NH * S + 2 * BS)
    w_bytes = NLAYERS * (4 * HID * HID * 2 + HID * PF * 2 + PF * HID * 2
                         + (4 * HID + 2 * HID + PF + HID) * 4)
    bytes_accessed = BS * HID * 2 + S * HID * 4 + B * S * 4 + w_bytes + BS * HID * 4

    const3 = lambda b: (0, 0, 0)   # weights resident across the batch grid
    grid_spec = pltpu.PrefetchScalarGridSpec(
        num_scalar_prefetch=0,
        grid=(B,),                                   # "parallel" -> megacore on v7x
        in_specs=[
            pl.BlockSpec((S, HID), lambda b: (b, 0)),        # tok  (per-batch rows)
            pl.BlockSpec((S, HID), lambda b: (0, 0)),        # pos  (shared)
            pl.BlockSpec((1, 1, S), lambda b: (b, 0, 0)),    # mask bias
            pl.BlockSpec((NLAYERS, HID, HID), const3),       # wq
            pl.BlockSpec((NLAYERS, 1, HID), const3),         # bq
            pl.BlockSpec((NLAYERS, HID, HID), const3),       # wk
            pl.BlockSpec((NLAYERS, 1, HID), const3),         # bk
            pl.BlockSpec((NLAYERS, HID, HID), const3),       # wv
            pl.BlockSpec((NLAYERS, 1, HID), const3),         # bv
            pl.BlockSpec((NLAYERS, HID, HID), const3),       # wo
            pl.BlockSpec((NLAYERS, 1, HID), const3),         # bo
            pl.BlockSpec((NLAYERS, 1, HID), const3),         # gamma
            pl.BlockSpec((NLAYERS, 1, HID), const3),         # beta
            pl.BlockSpec((NLAYERS, HID, PF), const3),        # w1
            pl.BlockSpec((NLAYERS, 1, PF), const3),          # b1
            pl.BlockSpec((NLAYERS, PF, HID), const3),        # w2
            pl.BlockSpec((NLAYERS, 1, HID), const3),         # b2
        ],
        out_specs=pl.BlockSpec((S, HID), lambda b: (b, 0)),
    )

    out = pl.pallas_call(
        encoder_kernel,
        out_shape=jax.ShapeDtypeStruct((B * S, HID), jnp.float32),
        grid_spec=grid_spec,
        compiler_params=pltpu.CompilerParams(
            dimension_semantics=("parallel",)),
        cost_estimate=pl.CostEstimate(
            flops=flops, transcendentals=transcendentals,
            bytes_accessed=bytes_accessed),
    )(tok, pos, bias, *weights)
    return out.reshape(B, S, HID)


def init_params(key):
    """Deterministic synthetic parameters.  Matmul weights are stored
    pre-transposed as [in, out] (kernel computes x @ W) in bf16; all layer
    weights are stacked along a leading layer axis."""
    def nrm(k, shape, std=0.02):
        return std * jax.random.normal(k, shape, dtype=jnp.float32)

    L = NLAYERS
    keys = jax.random.split(key, 3)
    lk = jax.random.split(keys[2], 12)
    params = {
        'tok_emb': nrm(keys[0], (VOCAB, HID), std=1.0),
        'pos_emb': nrm(keys[1], (MAXPOS, HID), std=1.0),
        'wq': nrm(lk[0], (L, HID, HID)).astype(jnp.bfloat16),
        'bq': nrm(lk[1], (L, 1, HID)),
        'wk': nrm(lk[2], (L, HID, HID)).astype(jnp.bfloat16),
        'bk': nrm(lk[3], (L, 1, HID)),
        'wv': nrm(lk[4], (L, HID, HID)).astype(jnp.bfloat16),
        'bv': nrm(lk[5], (L, 1, HID)),
        'wo': nrm(lk[6], (L, HID, HID)).astype(jnp.bfloat16),
        'bo': nrm(lk[7], (L, 1, HID)),
        'gamma': jnp.ones((L, 1, HID), jnp.float32),
        'beta': jnp.zeros((L, 1, HID), jnp.float32),
        # fc_1: Conv1d(HID, PF, 1) -> [HID, PF]; fc_2: Conv1d(PF, HID, 1) -> [PF, HID]
        'w1': nrm(lk[8], (L, HID, PF)).astype(jnp.bfloat16),
        'b1': nrm(lk[9], (L, 1, PF)),
        'w2': nrm(lk[10], (L, PF, HID)).astype(jnp.bfloat16),
        'b2': nrm(lk[11], (L, 1, HID)),
    }
    return params


if __name__ == "__main__":
    key = jax.random.PRNGKey(0)
    pkey, tkey = jax.random.split(key)
    params = init_params(pkey)

    B, S = 2, 8
    src_tokens = jax.random.randint(tkey, (B, S), 0, VOCAB, dtype=jnp.int32)
    # simple padding mask: first sequence full length, second has 2 padded positions
    lengths = jnp.array([S, S - 2], dtype=jnp.int32)
    src_mask = (jnp.arange(S)[None, :] < lengths[:, None]).astype(jnp.int32)  # [B, S]

    out = encoder_forward(src_tokens, src_mask, params)
    out = jax.block_until_ready(out)
    assert out.shape == (B, S, HID)
    assert bool(jnp.all(jnp.isfinite(out)))
    print("KERNEL_OK")
</pallas_src>

<mosaic_0001>
module attributes {stable_mosaic.version = 11 : i64} {
  func.func @encoder_kernel(%arg0: i32, %arg1: memref<8x32xbf16, #tpu.memory_space<vmem>>, %arg2: memref<8x32xf32, #tpu.memory_space<vmem>>, %arg3: memref<1x1x8xf32, #tpu.memory_space<vmem>>, %arg4: memref<2x32x32xbf16, #tpu.memory_space<vmem>>, %arg5: memref<2x1x32xf32, #tpu.memory_space<vmem>>, %arg6: memref<2x32x32xbf16, #tpu.memory_space<vmem>>, %arg7: memref<2x1x32xf32, #tpu.memory_space<vmem>>, %arg8: memref<2x32x32xbf16, #tpu.memory_space<vmem>>, %arg9: memref<2x1x32xf32, #tpu.memory_space<vmem>>, %arg10: memref<2x32x32xbf16, #tpu.memory_space<vmem>>, %arg11: memref<2x1x32xf32, #tpu.memory_space<vmem>>, %arg12: memref<2x1x32xf32, #tpu.memory_space<vmem>>, %arg13: memref<2x1x32xf32, #tpu.memory_space<vmem>>, %arg14: memref<2x32x64xbf16, #tpu.memory_space<vmem>>, %arg15: memref<2x1x64xf32, #tpu.memory_space<vmem>>, %arg16: memref<2x64x32xbf16, #tpu.memory_space<vmem>>, %arg17: memref<2x1x32xf32, #tpu.memory_space<vmem>>, %arg18: memref<8x32xf32, #tpu.memory_space<vmem>>) attributes {dimension_semantics = [#tpu.dimension_semantics<parallel>], iteration_bounds = array<i64: 2>, scalar_prefetch = 0 : i64, scratch_operands = 0 : i64, tpu.core_type = #tpu.core_type<tc>, window_params = [{transform_indices = @transform_0, window_bounds = array<i64: 8, 32>}, {pipeline_mode = #tpu.pipeline_mode<synchronous>, transform_indices = @transform_1, window_bounds = array<i64: 8, 32>}, {transform_indices = @transform_2, window_bounds = array<i64: 1, 1, 8>}, {pipeline_mode = #tpu.pipeline_mode<synchronous>, transform_indices = @transform_3, window_bounds = array<i64: 2, 32, 32>}, {pipeline_mode = #tpu.pipeline_mode<synchronous>, transform_indices = @transform_4, window_bounds = array<i64: 2, 1, 32>}, {pipeline_mode = #tpu.pipeline_mode<synchronous>, transform_indices = @transform_5, window_bounds = array<i64: 2, 32, 32>}, {pipeline_mode = #tpu.pipeline_mode<synchronous>, transform_indices = @transform_6, window_bounds = array<i64: 2, 1, 32>}, {pipeline_mode = #tpu.pipeline_mode<synchronous>, transform_indices = @transform_7, window_bounds = array<i64: 2, 32, 32>}, {pipeline_mode = #tpu.pipeline_mode<synchronous>, transform_indices = @transform_8, window_bounds = array<i64: 2, 1, 32>}, {pipeline_mode = #tpu.pipeline_mode<synchronous>, transform_indices = @transform_9, window_bounds = array<i64: 2, 32, 32>}, {pipeline_mode = #tpu.pipeline_mode<synchronous>, transform_indices = @transform_10, window_bounds = array<i64: 2, 1, 32>}, {pipeline_mode = #tpu.pipeline_mode<synchronous>, transform_indices = @transform_11, window_bounds = array<i64: 2, 1, 32>}, {pipeline_mode = #tpu.pipeline_mode<synchronous>, transform_indices = @transform_12, window_bounds = array<i64: 2, 1, 32>}, {pipeline_mode = #tpu.pipeline_mode<synchronous>, transform_indices = @transform_13, window_bounds = array<i64: 2, 32, 64>}, {pipeline_mode = #tpu.pipeline_mode<synchronous>, transform_indices = @transform_14, window_bounds = array<i64: 2, 1, 64>}, {pipeline_mode = #tpu.pipeline_mode<synchronous>, transform_indices = @transform_15, window_bounds = array<i64: 2, 64, 32>}, {pipeline_mode = #tpu.pipeline_mode<synchronous>, transform_indices = @transform_16, window_bounds = array<i64: 2, 1, 32>}, {transform_indices = @transform_17, window_bounds = array<i64: 8, 32>}]} {
    %c0 = arith.constant 0 : index
    %c0_0 = arith.constant 0 : index
    %0 = vector.load %arg1[%c0, %c0_0] : memref<8x32xbf16, #tpu.memory_space<vmem>>, vector<8x32xbf16>
    %1 = arith.extf %0 : vector<8x32xbf16> to vector<8x32xf32>
    %cst = arith.constant 5.65685415 : f32
    %2 = vector.broadcast %cst : f32 to vector<8x32xf32>
    %3 = arith.mulf %1, %2 : vector<8x32xf32>
    %c0_1 = arith.constant 0 : index
    %c0_2 = arith.constant 0 : index
    %4 = vector.load %arg2[%c0_1, %c0_2] : memref<8x32xf32, #tpu.memory_space<vmem>>, vector<8x32xf32>
    %5 = arith.addf %3, %4 : vector<8x32xf32>
    %c0_3 = arith.constant 0 : index
    %c0_4 = arith.constant 0 : index
    %c0_5 = arith.constant 0 : index
    %6 = vector.load %arg3[%c0_3, %c0_4, %c0_5] : memref<1x1x8xf32, #tpu.memory_space<vmem>>, vector<1x1x8xf32>
    %c0_6 = arith.constant 0 : index
    %c0_7 = arith.constant 0 : index
    %c0_8 = arith.constant 0 : index
    %7 = vector.load %arg4[%c0_6, %c0_7, %c0_8] : memref<2x32x32xbf16, #tpu.memory_space<vmem>>, vector<1x32x32xbf16>
    %8 = vector.shape_cast %7 : vector<1x32x32xbf16> to vector<32x32xbf16>
    %c0_9 = arith.constant 0 : index
    %c0_10 = arith.constant 0 : index
    %c0_11 = arith.constant 0 : index
    %9 = vector.load %arg6[%c0_9, %c0_10, %c0_11] : memref<2x32x32xbf16, #tpu.memory_space<vmem>>, vector<1x32x32xbf16>
    %10 = vector.shape_cast %9 : vector<1x32x32xbf16> to vector<32x32xbf16>
    %c0_12 = arith.constant 0 : index
    %c0_13 = arith.constant 0 : index
    %c0_14 = arith.constant 0 : index
    %11 = vector.load %arg8[%c0_12, %c0_13, %c0_14] : memref<2x32x32xbf16, #tpu.memory_space<vmem>>, vector<1x32x32xbf16>
    %12 = vector.shape_cast %11 : vector<1x32x32xbf16> to vector<32x32xbf16>
    %c0_15 = arith.constant 0 : index
    %c0_16 = arith.constant 0 : index
    %c0_17 = arith.constant 0 : index
    %13 = vector.load %arg10[%c0_15, %c0_16, %c0_17] : memref<2x32x32xbf16, #tpu.memory_space<vmem>>, vector<1x32x32xbf16>
    %14 = vector.shape_cast %13 : vector<1x32x32xbf16> to vector<32x32xbf16>
    %c0_18 = arith.constant 0 : index
    %c0_19 = arith.constant 0 : index
    %c0_20 = arith.constant 0 : index
    %15 = vector.load %arg5[%c0_18, %c0_19, %c0_20] : memref<2x1x32xf32, #tpu.memory_space<vmem>>, vector<1x1x32xf32>
    %16 = vector.shape_cast %15 : vector<1x1x32xf32> to vector<1x32xf32>
    %c0_21 = arith.constant 0 : index
    %c0_22 = arith.constant 0 : index
    %c0_23 = arith.constant 0 : index
    %17 = vector.load %arg7[%c0_21, %c0_22, %c0_23] : memref<2x1x32xf32, #tpu.memory_space<vmem>>, vector<1x1x32xf32>
    %18 = vector.shape_cast %17 : vector<1x1x32xf32> to vector<1x32xf32>
    %c0_24 = arith.constant 0 : index
    %c0_25 = arith.constant 0 : index
    %c0_26 = arith.constant 0 : index
    %19 = vector.load %arg9[%c0_24, %c0_25, %c0_26] : memref<2x1x32xf32, #tpu.memory_space<vmem>>, vector<1x1x32xf32>
    %20 = vector.shape_cast %19 : vector<1x1x32xf32> to vector<1x32xf32>
    %c0_27 = arith.constant 0 : index
    %c0_28 = arith.constant 0 : index
    %c0_29 = arith.constant 0 : index
    %21 = vector.load %arg11[%c0_27, %c0_28, %c0_29] : memref<2x1x32xf32, #tpu.memory_space<vmem>>, vector<1x1x32xf32>
    %22 = vector.shape_cast %21 : vector<1x1x32xf32> to vector<1x32xf32>
    %c0_30 = arith.constant 0 : index
    %c0_31 = arith.constant 0 : index
    %c0_32 = arith.constant 0 : index
    %23 = vector.load %arg12[%c0_30, %c0_31, %c0_32] : memref<2x1x32xf32, #tpu.memory_space<vmem>>, vector<1x1x32xf32>
    %24 = vector.shape_cast %23 : vector<1x1x32xf32> to vector<1x32xf32>
    %c0_33 = arith.constant 0 : index
    %c0_34 = arith.constant 0 : index
    %c0_35 = arith.constant 0 : index
    %25 = vector.load %arg13[%c0_33, %c0_34, %c0_35] : memref<2x1x32xf32, #tpu.memory_space<vmem>>, vector<1x1x32xf32>
    %26 = vector.shape_cast %25 : vector<1x1x32xf32> to vector<1x32xf32>
    %27 = arith.truncf %5 : vector<8x32xf32> to vector<8x32xbf16>
    %cst_36 = arith.constant dense<0.000000e+00> : vector<8x32xf32>
    %28 = tpu.matmul %27, %8, %cst_36 {dimension_numbers = #tpu.dot_dimension_numbers<[1], [0], [0], [1], [0, 0, 1, 1], [], []>} : vector<8x32xbf16>, vector<32x32xbf16>, vector<8x32xf32> -> vector<8x32xf32>
    %29 = vector.broadcast %16 : vector<1x32xf32> to vector<8x32xf32>
    %30 = arith.addf %28, %29 : vector<8x32xf32>
    %cst_37 = arith.constant 0.353553385 : f32
    %31 = vector.broadcast %cst_37 : f32 to vector<8x32xf32>
    %32 = arith.mulf %30, %31 : vector<8x32xf32>
    %33 = arith.truncf %32 : vector<8x32xf32> to vector<8x32xbf16>
    %cst_38 = arith.constant dense<0.000000e+00> : vector<8x32xf32>
    %34 = tpu.matmul %27, %10, %cst_38 {dimension_numbers = #tpu.dot_dimension_numbers<[1], [0], [0], [1], [0, 0, 1, 1], [], []>} : vector<8x32xbf16>, vector<32x32xbf16>, vector<8x32xf32> -> vector<8x32xf32>
    %35 = vector.broadcast %18 : vector<1x32xf32> to vector<8x32xf32>
    %36 = arith.addf %34, %35 : vector<8x32xf32>
    %37 = arith.truncf %36 : vector<8x32xf32> to vector<8x32xbf16>
    %cst_39 = arith.constant dense<0.000000e+00> : vector<8x32xf32>
    %38 = tpu.matmul %27, %12, %cst_39 {dimension_numbers = #tpu.dot_dimension_numbers<[1], [0], [0], [1], [0, 0, 1, 1], [], []>} : vector<8x32xbf16>, vector<32x32xbf16>, vector<8x32xf32> -> vector<8x32xf32>
    %39 = vector.broadcast %20 : vector<1x32xf32> to vector<8x32xf32>
    %40 = arith.addf %38, %39 : vector<8x32xf32>
    %41 = arith.truncf %40 : vector<8x32xf32> to vector<8x32xbf16>
    %42 = vector.shape_cast %33 : vector<8x32xbf16> to vector<8x4x8xbf16>
    %43 = tpu.transpose %42, [1, 0, 2] : vector<8x4x8xbf16> -> vector<4x8x8xbf16>
    %44 = vector.shape_cast %37 : vector<8x32xbf16> to vector<8x4x8xbf16>
    %45 = tpu.transpose %44, [1, 0, 2] : vector<8x4x8xbf16> -> vector<4x8x8xbf16>
    %46 = vector.shape_cast %41 : vector<8x32xbf16> to vector<8x4x8xbf16>
    %47 = tpu.transpose %46, [1, 0, 2] : vector<8x4x8xbf16> -> vector<4x8x8xbf16>
    "tpu.trace_start"() <{level = 10 : i32, message = "hqd,hkd->hqk"}> : () -> ()
    %cst_40 = arith.constant dense<0.000000e+00> : vector<4x8x8xf32>
    %48 = tpu.matmul %43, %45, %cst_40 {dimension_numbers = #tpu.dot_dimension_numbers<[2], [2], [1], [1], [0, 0, 0, 1, 1, 1], [0], [0]>} : vector<4x8x8xbf16>, vector<4x8x8xbf16>, vector<4x8x8xf32> -> vector<4x8x8xf32>
    "tpu.trace_stop"() : () -> ()
    %49 = vector.broadcast %6 : vector<1x1x8xf32> to vector<4x8x8xf32>
    %50 = arith.addf %48, %49 : vector<4x8x8xf32>
    %cst_41 = arith.constant dense<0xFF800000> : vector<4x8xf32>
    %51 = vector.multi_reduction <maximumf>, %50, %cst_41 [2] : vector<4x8x8xf32> to vector<4x8xf32>
    %52 = vector.shape_cast %51 : vector<4x8xf32> to vector<4x8x1xf32>
    %53 = vector.broadcast %52 : vector<4x8x1xf32> to vector<4x8x8xf32>
    %54 = arith.subf %50, %53 : vector<4x8x8xf32>
    %55 = math.exp %54 : vector<4x8x8xf32>
    %cst_42 = arith.constant dense<0.000000e+00> : vector<4x8xf32>
    %56 = vector.multi_reduction <add>, %55, %cst_42 [2] : vector<4x8x8xf32> to vector<4x8xf32>
    %57 = vector.shape_cast %56 : vector<4x8xf32> to vector<4x8x1xf32>
    %58 = tpu.reciprocal %57 {approx = true} : vector<4x8x1xf32> -> vector<4x8x1xf32>
    %59 = vector.broadcast %58 : vector<4x8x1xf32> to vector<4x8x8xf32>
    %60 = arith.mulf %55, %59 : vector<4x8x8xf32>
    %61 = arith.truncf %60 : vector<4x8x8xf32> to vector<4x8x8xbf16>
    "tpu.trace_start"() <{level = 10 : i32, message = "hqk,hkd->hqd"}> : () -> ()
    %cst_43 = arith.constant dense<0.000000e+00> : vector<4x8x8xf32>
    %62 = tpu.matmul %61, %47, %cst_43 {dimension_numbers = #tpu.dot_dimension_numbers<[2], [1], [1], [2], [0, 0, 0, 1, 1, 2], [0], [0]>} : vector<4x8x8xbf16>, vector<4x8x8xbf16>, vector<4x8x8xf32> -> vector<4x8x8xf32>
    "tpu.trace_stop"() : () -> ()
    %63 = tpu.transpose %62, [1, 0, 2] : vector<4x8x8xf32> -> vector<8x4x8xf32>
    %64 = vector.shape_cast %63 : vector<8x4x8xf32> to vector<8x32xf32>
    %65 = arith.truncf %64 : vector<8x32xf32> to vector<8x32xbf16>
    %cst_44 = arith.constant dense<0.000000e+00> : vector<8x32xf32>
    %66 = tpu.matmul %65, %14, %cst_44 {dimension_numbers = #tpu.dot_dimension_numbers<[1], [0], [0], [1], [0, 0, 1, 1], [], []>} : vector<8x32xbf16>, vector<32x32xbf16>, vector<8x32xf32> -> vector<8x32xf32>
    %67 = vector.broadcast %22 : vector<1x32xf32> to vector<8x32xf32>
    %68 = arith.addf %66, %67 : vector<8x32xf32>
    %69 = arith.addf %5, %68 : vector<8x32xf32>
    %cst_45 = arith.constant dense<0.000000e+00> : vector<8xf32>
    %70 = vector.multi_reduction <add>, %69, %cst_45 [1] : vector<8x32xf32> to vector<8xf32>
    %71 = vector.shape_cast %70 : vector<8xf32> to vector<8x1xf32>
    %cst_46 = arith.constant 3.200000e+01 : f32
    %72 = vector.broadcast %cst_46 : f32 to vector<8x1xf32>
    %73 = arith.divf %71, %72 : vector<8x1xf32>
    %74 = vector.broadcast %73 : vector<8x1xf32> to vector<8x32xf32>
    %75 = arith.subf %69, %74 : vector<8x32xf32>
    %76 = arith.mulf %75, %75 : vector<8x32xf32>
    %cst_47 = arith.constant dense<0.000000e+00> : vector<8xf32>
    %77 = vector.multi_reduction <add>, %76, %cst_47 [1] : vector<8x32xf32> to vector<8xf32>
    %78 = vector.shape_cast %77 : vector<8xf32> to vector<8x1xf32>
    %cst_48 = arith.constant 3.200000e+01 : f32
    %79 = vector.broadcast %cst_48 : f32 to vector<8x1xf32>
    %80 = arith.divf %78, %79 : vector<8x1xf32>
    %81 = vector.broadcast %73 : vector<8x1xf32> to vector<8x32xf32>
    %82 = arith.subf %69, %81 : vector<8x32xf32>
    %cst_49 = arith.constant 9.99999974E-6 : f32
    %83 = vector.broadcast %cst_49 : f32 to vector<8x1xf32>
    %84 = arith.addf %80, %83 : vector<8x1xf32>
    %85 = math.rsqrt %84 : vector<8x1xf32>
    %86 = vector.broadcast %85 : vector<8x1xf32> to vector<8x32xf32>
    %87 = arith.mulf %82, %86 : vector<8x32xf32>
    %88 = vector.broadcast %24 : vector<1x32xf32> to vector<8x32xf32>
    %89 = arith.mulf %87, %88 : vector<8x32xf32>
    %90 = vector.broadcast %26 : vector<1x32xf32> to vector<8x32xf32>
    %91 = arith.addf %89, %90 : vector<8x32xf32>
    %92 = arith.truncf %91 : vector<8x32xf32> to vector<8x32xbf16>
    %c0_50 = arith.constant 0 : index
    %c0_51 = arith.constant 0 : index
    %c0_52 = arith.constant 0 : index
    %93 = vector.load %arg14[%c0_50, %c0_51, %c0_52] : memref<2x32x64xbf16, #tpu.memory_space<vmem>>, vector<1x32x64xbf16>
    %94 = vector.shape_cast %93 : vector<1x32x64xbf16> to vector<32x64xbf16>
    %cst_53 = arith.constant dense<0.000000e+00> : vector<8x64xf32>
    %95 = tpu.matmul %92, %94, %cst_53 {dimension_numbers = #tpu.dot_dimension_numbers<[1], [0], [0], [1], [0, 0, 1, 1], [], []>} : vector<8x32xbf16>, vector<32x64xbf16>, vector<8x64xf32> -> vector<8x64xf32>
    %c0_54 = arith.constant 0 : index
    %c0_55 = arith.constant 0 : index
    %c0_56 = arith.constant 0 : index
    %96 = vector.load %arg15[%c0_54, %c0_55, %c0_56] : memref<2x1x64xf32, #tpu.memory_space<vmem>>, vector<1x1x64xf32>
    %97 = vector.shape_cast %96 : vector<1x1x64xf32> to vector<1x64xf32>
    %98 = vector.broadcast %97 : vector<1x64xf32> to vector<8x64xf32>
    %99 = arith.addf %95, %98 : vector<8x64xf32>
    %cst_57 = arith.constant 0.000000e+00 : f32
    %100 = vector.broadcast %cst_57 : f32 to vector<8x64xf32>
    %101 = arith.maximumf %99, %100 : vector<8x64xf32>
    %102 = arith.truncf %101 : vector<8x64xf32> to vector<8x64xbf16>
    %c0_58 = arith.constant 0 : index
    %c0_59 = arith.constant 0 : index
    %c0_60 = arith.constant 0 : index
    %103 = vector.load %arg16[%c0_58, %c0_59, %c0_60] : memref<2x64x32xbf16, #tpu.memory_space<vmem>>, vector<1x64x32xbf16>
    %104 = vector.shape_cast %103 : vector<1x64x32xbf16> to vector<64x32xbf16>
    %cst_61 = arith.constant dense<0.000000e+00> : vector<8x32xf32>
    %105 = tpu.matmul %102, %104, %cst_61 {dimension_numbers = #tpu.dot_dimension_numbers<[1], [0], [0], [1], [0, 0, 1, 1], [], []>} : vector<8x64xbf16>, vector<64x32xbf16>, vector<8x32xf32> -> vector<8x32xf32>
    %c0_62 = arith.constant 0 : index
    %c0_63 = arith.constant 0 : index
    %c0_64 = arith.constant 0 : index
    %106 = vector.load %arg17[%c0_62, %c0_63, %c0_64] : memref<2x1x32xf32, #tpu.memory_space<vmem>>, vector<1x1x32xf32>
    %107 = vector.shape_cast %106 : vector<1x1x32xf32> to vector<1x32xf32>
    %108 = vector.broadcast %107 : vector<1x32xf32> to vector<8x32xf32>
    %109 = arith.addf %105, %108 : vector<8x32xf32>
    %110 = arith.addf %91, %109 : vector<8x32xf32>
    %cst_65 = arith.constant dense<0.000000e+00> : vector<8xf32>
    %111 = vector.multi_reduction <add>, %110, %cst_65 [1] : vector<8x32xf32> to vector<8xf32>
    %112 = vector.shape_cast %111 : vector<8xf32> to vector<8x1xf32>
    %cst_66 = arith.constant 3.200000e+01 : f32
    %113 = vector.broadcast %cst_66 : f32 to vector<8x1xf32>
    %114 = arith.divf %112, %113 : vector<8x1xf32>
    %115 = vector.broadcast %114 : vector<8x1xf32> to vector<8x32xf32>
    %116 = arith.subf %110, %115 : vector<8x32xf32>
    %117 = arith.mulf %116, %116 : vector<8x32xf32>
    %cst_67 = arith.constant dense<0.000000e+00> : vector<8xf32>
    %118 = vector.multi_reduction <add>, %117, %cst_67 [1] : vector<8x32xf32> to vector<8xf32>
    %119 = vector.shape_cast %118 : vector<8xf32> to vector<8x1xf32>
    %cst_68 = arith.constant 3.200000e+01 : f32
    %120 = vector.broadcast %cst_68 : f32 to vector<8x1xf32>
    %121 = arith.divf %119, %120 : vector<8x1xf32>
    %122 = vector.broadcast %114 : vector<8x1xf32> to vector<8x32xf32>
    %123 = arith.subf %110, %122 : vector<8x32xf32>
    %cst_69 = arith.constant 9.99999974E-6 : f32
    %124 = vector.broadcast %cst_69 : f32 to vector<8x1xf32>
    %125 = arith.addf %121, %124 : vector<8x1xf32>
    %126 = math.rsqrt %125 : vector<8x1xf32>
    %127 = vector.broadcast %126 : vector<8x1xf32> to vector<8x32xf32>
    %128 = arith.mulf %123, %127 : vector<8x32xf32>
    %129 = vector.broadcast %24 : vector<1x32xf32> to vector<8x32xf32>
    %130 = arith.mulf %128, %129 : vector<8x32xf32>
    %131 = vector.broadcast %26 : vector<1x32xf32> to vector<8x32xf32>
    %132 = arith.addf %130, %131 : vector<8x32xf32>
    %c1 = arith.constant 1 : index
    %c0_70 = arith.constant 0 : index
    %c0_71 = arith.constant 0 : index
    %133 = vector.load %arg4[%c1, %c0_70, %c0_71] : memref<2x32x32xbf16, #tpu.memory_space<vmem>>, vector<1x32x32xbf16>
    %134 = vector.shape_cast %133 : vector<1x32x32xbf16> to vector<32x32xbf16>
    %c1_72 = arith.constant 1 : index
    %c0_73 = arith.constant 0 : index
    %c0_74 = arith.constant 0 : index
    %135 = vector.load %arg6[%c1_72, %c0_73, %c0_74] : memref<2x32x32xbf16, #tpu.memory_space<vmem>>, vector<1x32x32xbf16>
    %136 = vector.shape_cast %135 : vector<1x32x32xbf16> to vector<32x32xbf16>
    %c1_75 = arith.constant 1 : index
    %c0_76 = arith.constant 0 : index
    %c0_77 = arith.constant 0 : index
    %137 = vector.load %arg8[%c1_75, %c0_76, %c0_77] : memref<2x32x32xbf16, #tpu.memory_space<vmem>>, vector<1x32x32xbf16>
    %138 = vector.shape_cast %137 : vector<1x32x32xbf16> to vector<32x32xbf16>
    %c1_78 = arith.constant 1 : index
    %c0_79 = arith.constant 0 : index
    %c0_80 = arith.constant 0 : index
    %139 = vector.load %arg10[%c1_78, %c0_79, %c0_80] : memref<2x32x32xbf16, #tpu.memory_space<vmem>>, vector<1x32x32xbf16>
    %140 = vector.shape_cast %139 : vector<1x32x32xbf16> to vector<32x32xbf16>
    %c1_81 = arith.constant 1 : index
    %c0_82 = arith.constant 0 : index
    %c0_83 = arith.constant 0 : index
    %141 = vector.load %arg5[%c1_81, %c0_82, %c0_83] : memref<2x1x32xf32, #tpu.memory_space<vmem>>, vector<1x1x32xf32>
    %142 = vector.shape_cast %141 : vector<1x1x32xf32> to vector<1x32xf32>
    %c1_84 = arith.constant 1 : index
    %c0_85 = arith.constant 0 : index
    %c0_86 = arith.constant 0 : index
    %143 = vector.load %arg7[%c1_84, %c0_85, %c0_86] : memref<2x1x32xf32, #tpu.memory_space<vmem>>, vector<1x1x32xf32>
    %144 = vector.shape_cast %143 : vector<1x1x32xf32> to vector<1x32xf32>
    %c1_87 = arith.constant 1 : index
    %c0_88 = arith.constant 0 : index
    %c0_89 = arith.constant 0 : index
    %145 = vector.load %arg9[%c1_87, %c0_88, %c0_89] : memref<2x1x32xf32, #tpu.memory_space<vmem>>, vector<1x1x32xf32>
    %146 = vector.shape_cast %145 : vector<1x1x32xf32> to vector<1x32xf32>
    %c1_90 = arith.constant 1 : index
    %c0_91 = arith.constant 0 : index
    %c0_92 = arith.constant 0 : index
    %147 = vector.load %arg11[%c1_90, %c0_91, %c0_92] : memref<2x1x32xf32, #tpu.memory_space<vmem>>, vector<1x1x32xf32>
    %148 = vector.shape_cast %147 : vector<1x1x32xf32> to vector<1x32xf32>
    %c1_93 = arith.constant 1 : index
    %c0_94 = arith.constant 0 : index
    %c0_95 = arith.constant 0 : index
    %149 = vector.load %arg12[%c1_93, %c0_94, %c0_95] : memref<2x1x32xf32, #tpu.memory_space<vmem>>, vector<1x1x32xf32>
    %150 = vector.shape_cast %149 : vector<1x1x32xf32> to vector<1x32xf32>
    %c1_96 = arith.constant 1 : index
    %c0_97 = arith.constant 0 : index
    %c0_98 = arith.constant 0 : index
    %151 = vector.load %arg13[%c1_96, %c0_97, %c0_98] : memref<2x1x32xf32, #tpu.memory_space<vmem>>, vector<1x1x32xf32>
    %152 = vector.shape_cast %151 : vector<1x1x32xf32> to vector<1x32xf32>
    %153 = arith.truncf %132 : vector<8x32xf32> to vector<8x32xbf16>
    %cst_99 = arith.constant dense<0.000000e+00> : vector<8x32xf32>
    %154 = tpu.matmul %153, %134, %cst_99 {dimension_numbers = #tpu.dot_dimension_numbers<[1], [0], [0], [1], [0, 0, 1, 1], [], []>} : vector<8x32xbf16>, vector<32x32xbf16>, vector<8x32xf32> -> vector<8x32xf32>
    %155 = vector.broadcast %142 : vector<1x32xf32> to vector<8x32xf32>
    %156 = arith.addf %154, %155 : vector<8x32xf32>
    %cst_100 = arith.constant 0.353553385 : f32
    %157 = vector.broadcast %cst_100 : f32 to vector<8x32xf32>
    %158 = arith.mulf %156, %157 : vector<8x32xf32>
    %159 = arith.truncf %158 : vector<8x32xf32> to vector<8x32xbf16>
    %cst_101 = arith.constant dense<0.000000e+00> : vector<8x32xf32>
    %160 = tpu.matmul %153, %136, %cst_101 {dimension_numbers = #tpu.dot_dimension_numbers<[1], [0], [0], [1], [0, 0, 1, 1], [], []>} : vector<8x32xbf16>, vector<32x32xbf16>, vector<8x32xf32> -> vector<8x32xf32>
    %161 = vector.broadcast %144 : vector<1x32xf32> to vector<8x32xf32>
    %162 = arith.addf %160, %161 : vector<8x32xf32>
    %163 = arith.truncf %162 : vector<8x32xf32> to vector<8x32xbf16>
    %cst_102 = arith.constant dense<0.000000e+00> : vector<8x32xf32>
    %164 = tpu.matmul %153, %138, %cst_102 {dimension_numbers = #tpu.dot_dimension_numbers<[1], [0], [0], [1], [0, 0, 1, 1], [], []>} : vector<8x32xbf16>, vector<32x32xbf16>, vector<8x32xf32> -> vector<8x32xf32>
    %165 = vector.broadcast %146 : vector<1x32xf32> to vector<8x32xf32>
    %166 = arith.addf %164, %165 : vector<8x32xf32>
    %167 = arith.truncf %166 : vector<8x32xf32> to vector<8x32xbf16>
    %168 = vector.shape_cast %159 : vector<8x32xbf16> to vector<8x4x8xbf16>
    %169 = tpu.transpose %168, [1, 0, 2] : vector<8x4x8xbf16> -> vector<4x8x8xbf16>
    %170 = vector.shape_cast %163 : vector<8x32xbf16> to vector<8x4x8xbf16>
    %171 = tpu.transpose %170, [1, 0, 2] : vector<8x4x8xbf16> -> vector<4x8x8xbf16>
    %172 = vector.shape_cast %167 : vector<8x32xbf16> to vector<8x4x8xbf16>
    %173 = tpu.transpose %172, [1, 0, 2] : vector<8x4x8xbf16> -> vector<4x8x8xbf16>
    "tpu.trace_start"() <{level = 10 : i32, message = "hqd,hkd->hqk"}> : () -> ()
    %cst_103 = arith.constant dense<0.000000e+00> : vector<4x8x8xf32>
    %174 = tpu.matmul %169, %171, %cst_103 {dimension_numbers = #tpu.dot_dimension_numbers<[2], [2], [1], [1], [0, 0, 0, 1, 1, 1], [0], [0]>} : vector<4x8x8xbf16>, vector<4x8x8xbf16>, vector<4x8x8xf32> -> vector<4x8x8xf32>
    "tpu.trace_stop"() : () -> ()
    %175 = vector.broadcast %6 : vector<1x1x8xf32> to vector<4x8x8xf32>
    %176 = arith.addf %174, %175 : vector<4x8x8xf32>
    %cst_104 = arith.constant dense<0xFF800000> : vector<4x8xf32>
    %177 = vector.multi_reduction <maximumf>, %176, %cst_104 [2] : vector<4x8x8xf32> to vector<4x8xf32>
    %178 = vector.shape_cast %177 : vector<4x8xf32> to vector<4x8x1xf32>
    %179 = vector.broadcast %178 : vector<4x8x1xf32> to vector<4x8x8xf32>
    %180 = arith.subf %176, %179 : vector<4x8x8xf32>
    %181 = math.exp %180 : vector<4x8x8xf32>
    %cst_105 = arith.constant dense<0.000000e+00> : vector<4x8xf32>
    %182 = vector.multi_reduction <add>, %181, %cst_105 [2] : vector<4x8x8xf32> to vector<4x8xf32>
    %183 = vector.shape_cast %182 : vector<4x8xf32> to vector<4x8x1xf32>
    %184 = tpu.reciprocal %183 {approx = true} : vector<4x8x1xf32> -> vector<4x8x1xf32>
    %185 = vector.broadcast %184 : vector<4x8x1xf32> to vector<4x8x8xf32>
    %186 = arith.mulf %181, %185 : vector<4x8x8xf32>
    %187 = arith.truncf %186 : vector<4x8x8xf32> to vector<4x8x8xbf16>
    "tpu.trace_start"() <{level = 10 : i32, message = "hqk,hkd->hqd"}> : () -> ()
    %cst_106 = arith.constant dense<0.000000e+00> : vector<4x8x8xf32>
    %188 = tpu.matmul %187, %173, %cst_106 {dimension_numbers = #tpu.dot_dimension_numbers<[2], [1], [1], [2], [0, 0, 0, 1, 1, 2], [0], [0]>} : vector<4x8x8xbf16>, vector<4x8x8xbf16>, vector<4x8x8xf32> -> vector<4x8x8xf32>
    "tpu.trace_stop"() : () -> ()
    %189 = tpu.transpose %188, [1, 0, 2] : vector<4x8x8xf32> -> vector<8x4x8xf32>
    %190 = vector.shape_cast %189 : vector<8x4x8xf32> to vector<8x32xf32>
    %191 = arith.truncf %190 : vector<8x32xf32> to vector<8x32xbf16>
    %cst_107 = arith.constant dense<0.000000e+00> : vector<8x32xf32>
    %192 = tpu.matmul %191, %140, %cst_107 {dimension_numbers = #tpu.dot_dimension_numbers<[1], [0], [0], [1], [0, 0, 1, 1], [], []>} : vector<8x32xbf16>, vector<32x32xbf16>, vector<8x32xf32> -> vector<8x32xf32>
    %193 = vector.broadcast %148 : vector<1x32xf32> to vector<8x32xf32>
    %194 = arith.addf %192, %193 : vector<8x32xf32>
    %195 = arith.addf %132, %194 : vector<8x32xf32>
    %cst_108 = arith.constant dense<0.000000e+00> : vector<8xf32>
    %196 = vector.multi_reduction <add>, %195, %cst_108 [1] : vector<8x32xf32> to vector<8xf32>
    %197 = vector.shape_cast %196 : vector<8xf32> to vector<8x1xf32>
    %cst_109 = arith.constant 3.200000e+01 : f32
    %198 = vector.broadcast %cst_109 : f32 to vector<8x1xf32>
    %199 = arith.divf %197, %198 : vector<8x1xf32>
    %200 = vector.broadcast %199 : vector<8x1xf32> to vector<8x32xf32>
    %201 = arith.subf %195, %200 : vector<8x32xf32>
    %202 = arith.mulf %201, %201 : vector<8x32xf32>
    %cst_110 = arith.constant dense<0.000000e+00> : vector<8xf32>
    %203 = vector.multi_reduction <add>, %202, %cst_110 [1] : vector<8x32xf32> to vector<8xf32>
    %204 = vector.shape_cast %203 : vector<8xf32> to vector<8x1xf32>
    %cst_111 = arith.constant 3.200000e+01 : f32
    %205 = vector.broadcast %cst_111 : f32 to vector<8x1xf32>
    %206 = arith.divf %204, %205 : vector<8x1xf32>
    %207 = vector.broadcast %199 : vector<8x1xf32> to vector<8x32xf32>
    %208 = arith.subf %195, %207 : vector<8x32xf32>
    %cst_112 = arith.constant 9.99999974E-6 : f32
    %209 = vector.broadcast %cst_112 : f32 to vector<8x1xf32>
    %210 = arith.addf %206, %209 : vector<8x1xf32>
    %211 = math.rsqrt %210 : vector<8x1xf32>
    %212 = vector.broadcast %211 : vector<8x1xf32> to vector<8x32xf32>
    %213 = arith.mulf %208, %212 : vector<8x32xf32>
    %214 = vector.broadcast %150 : vector<1x32xf32> to vector<8x32xf32>
    %215 = arith.mulf %213, %214 : vector<8x32xf32>
    %216 = vector.broadcast %152 : vector<1x32xf32> to vector<8x32xf32>
    %217 = arith.addf %215, %216 : vector<8x32xf32>
    %218 = arith.truncf %217 : vector<8x32xf32> to vector<8x32xbf16>
    %c1_113 = arith.constant 1 : index
    %c0_114 = arith.constant 0 : index
    %c0_115 = arith.constant 0 : index
    %219 = vector.load %arg14[%c1_113, %c0_114, %c0_115] : memref<2x32x64xbf16, #tpu.memory_space<vmem>>, vector<1x32x64xbf16>
    %220 = vector.shape_cast %219 : vector<1x32x64xbf16> to vector<32x64xbf16>
    %cst_116 = arith.constant dense<0.000000e+00> : vector<8x64xf32>
    %221 = tpu.matmul %218, %220, %cst_116 {dimension_numbers = #tpu.dot_dimension_numbers<[1], [0], [0], [1], [0, 0, 1, 1], [], []>} : vector<8x32xbf16>, vector<32x64xbf16>, vector<8x64xf32> -> vector<8x64xf32>
    %c1_117 = arith.constant 1 : index
    %c0_118 = arith.constant 0 : index
    %c0_119 = arith.constant 0 : index
    %222 = vector.load %arg15[%c1_117, %c0_118, %c0_119] : memref<2x1x64xf32, #tpu.memory_space<vmem>>, vector<1x1x64xf32>
    %223 = vector.shape_cast %222 : vector<1x1x64xf32> to vector<1x64xf32>
    %224 = vector.broadcast %223 : vector<1x64xf32> to vector<8x64xf32>
    %225 = arith.addf %221, %224 : vector<8x64xf32>
    %cst_120 = arith.constant 0.000000e+00 : f32
    %226 = vector.broadcast %cst_120 : f32 to vector<8x64xf32>
    %227 = arith.maximumf %225, %226 : vector<8x64xf32>
    %228 = arith.truncf %227 : vector<8x64xf32> to vector<8x64xbf16>
    %c1_121 = arith.constant 1 : index
    %c0_122 = arith.constant 0 : index
    %c0_123 = arith.constant 0 : index
    %229 = vector.load %arg16[%c1_121, %c0_122, %c0_123] : memref<2x64x32xbf16, #tpu.memory_space<vmem>>, vector<1x64x32xbf16>
    %230 = vector.shape_cast %229 : vector<1x64x32xbf16> to vector<64x32xbf16>
    %cst_124 = arith.constant dense<0.000000e+00> : vector<8x32xf32>
    %231 = tpu.matmul %228, %230, %cst_124 {dimension_numbers = #tpu.dot_dimension_numbers<[1], [0], [0], [1], [0, 0, 1, 1], [], []>} : vector<8x64xbf16>, vector<64x32xbf16>, vector<8x32xf32> -> vector<8x32xf32>
    %c1_125 = arith.constant 1 : index
    %c0_126 = arith.constant 0 : index
    %c0_127 = arith.constant 0 : index
    %232 = vector.load %arg17[%c1_125, %c0_126, %c0_127] : memref<2x1x32xf32, #tpu.memory_space<vmem>>, vector<1x1x32xf32>
    %233 = vector.shape_cast %232 : vector<1x1x32xf32> to vector<1x32xf32>
    %234 = vector.broadcast %233 : vector<1x32xf32> to vector<8x32xf32>
    %235 = arith.addf %231, %234 : vector<8x32xf32>
    %236 = arith.addf %217, %235 : vector<8x32xf32>
    %cst_128 = arith.constant dense<0.000000e+00> : vector<8xf32>
    %237 = vector.multi_reduction <add>, %236, %cst_128 [1] : vector<8x32xf32> to vector<8xf32>
    %238 = vector.shape_cast %237 : vector<8xf32> to vector<8x1xf32>
    %cst_129 = arith.constant 3.200000e+01 : f32
    %239 = vector.broadcast %cst_129 : f32 to vector<8x1xf32>
    %240 = arith.divf %238, %239 : vector<8x1xf32>
    %241 = vector.broadcast %240 : vector<8x1xf32> to vector<8x32xf32>
    %242 = arith.subf %236, %241 : vector<8x32xf32>
    %243 = arith.mulf %242, %242 : vector<8x32xf32>
    %cst_130 = arith.constant dense<0.000000e+00> : vector<8xf32>
    %244 = vector.multi_reduction <add>, %243, %cst_130 [1] : vector<8x32xf32> to vector<8xf32>
    %245 = vector.shape_cast %244 : vector<8xf32> to vector<8x1xf32>
    %cst_131 = arith.constant 3.200000e+01 : f32
    %246 = vector.broadcast %cst_131 : f32 to vector<8x1xf32>
    %247 = arith.divf %245, %246 : vector<8x1xf32>
    %248 = vector.broadcast %240 : vector<8x1xf32> to vector<8x32xf32>
    %249 = arith.subf %236, %248 : vector<8x32xf32>
    %cst_132 = arith.constant 9.99999974E-6 : f32
    %250 = vector.broadcast %cst_132 : f32 to vector<8x1xf32>
    %251 = arith.addf %247, %250 : vector<8x1xf32>
    %252 = math.rsqrt %251 : vector<8x1xf32>
    %253 = vector.broadcast %252 : vector<8x1xf32> to vector<8x32xf32>
    %254 = arith.mulf %249, %253 : vector<8x32xf32>
    %255 = vector.broadcast %150 : vector<1x32xf32> to vector<8x32xf32>
    %256 = arith.mulf %254, %255 : vector<8x32xf32>
    %257 = vector.broadcast %152 : vector<1x32xf32> to vector<8x32xf32>
    %258 = arith.addf %256, %257 : vector<8x32xf32>
    %c0_133 = arith.constant 0 : index
    %c0_134 = arith.constant 0 : index
    %259 = vector.load %arg18[%c0_133, %c0_134] : memref<8x32xf32, #tpu.memory_space<vmem>>, vector<8x32xf32>
    tpu.vector_store %arg18[%c0_133, %c0_134], %258 {strides = array<i32>} : memref<8x32xf32, #tpu.memory_space<vmem>>, vector<8x32xf32>,
    return
  }
  func.func @transform_0(%arg0: i32) -> (i32, i32) {
    %c0_i32 = arith.constant 0 : i32
    %c0_i32_0 = arith.constant 0 : i32
    return %arg0, %c0_i32 : i32, i32
  }
  func.func @transform_1(%arg0: i32) -> (i32, i32) {
    %c0_i32 = arith.constant 0 : i32
    %c0_i32_0 = arith.constant 0 : i32
    %c0_i32_1 = arith.constant 0 : i32
    return %c0_i32, %c0_i32_0 : i32, i32
  }
  func.func @transform_2(%arg0: i32) -> (i32, i32, i32) {
    %c0_i32 = arith.constant 0 : i32
    %c0_i32_0 = arith.constant 0 : i32
    %c0_i32_1 = arith.constant 0 : i32
    return %arg0, %c0_i32, %c0_i32_0 : i32, i32, i32
  }
  func.func @transform_3(%arg0: i32) -> (i32, i32, i32) {
    %c0_i32 = arith.constant 0 : i32
    %c0_i32_0 = arith.constant 0 : i32
    %c0_i32_1 = arith.constant 0 : i32
    %c0_i32_2 = arith.constant 0 : i32
    return %c0_i32, %c0_i32_0, %c0_i32_1 : i32, i32, i32
  }
  func.func @transform_4(%arg0: i32) -> (i32, i32, i32) {
    %c0_i32 = arith.constant 0 : i32
    %c0_i32_0 = arith.constant 0 : i32
    %c0_i32_1 = arith.constant 0 : i32
    %c0_i32_2 = arith.constant 0 : i32
    return %c0_i32, %c0_i32_0, %c0_i32_1 : i32, i32, i32
  }
  func.func @transform_5(%arg0: i32) -> (i32, i32, i32) {
    %c0_i32 = arith.constant 0 : i32
    %c0_i32_0 = arith.constant 0 : i32
    %c0_i32_1 = arith.constant 0 : i32
    %c0_i32_2 = arith.constant 0 : i32
    return %c0_i32, %c0_i32_0, %c0_i32_1 : i32, i32, i32
  }
  func.func @transform_6(%arg0: i32) -> (i32, i32, i32) {
    %c0_i32 = arith.constant 0 : i32
    %c0_i32_0 = arith.constant 0 : i32
    %c0_i32_1 = arith.constant 0 : i32
    %c0_i32_2 = arith.constant 0 : i32
    return %c0_i32, %c0_i32_0, %c0_i32_1 : i32, i32, i32
  }
  func.func @transform_7(%arg0: i32) -> (i32, i32, i32) {
    %c0_i32 = arith.constant 0 : i32
    %c0_i32_0 = arith.constant 0 : i32
    %c0_i32_1 = arith.constant 0 : i32
    %c0_i32_2 = arith.constant 0 : i32
    return %c0_i32, %c0_i32_0, %c0_i32_1 : i32, i32, i32
  }
  func.func @transform_8(%arg0: i32) -> (i32, i32, i32) {
    %c0_i32 = arith.constant 0 : i32
    %c0_i32_0 = arith.constant 0 : i32
    %c0_i32_1 = arith.constant 0 : i32
    %c0_i32_2 = arith.constant 0 : i32
    return %c0_i32, %c0_i32_0, %c0_i32_1 : i32, i32, i32
  }
  func.func @transform_9(%arg0: i32) -> (i32, i32, i32) {
    %c0_i32 = arith.constant 0 : i32
    %c0_i32_0 = arith.constant 0 : i32
    %c0_i32_1 = arith.constant 0 : i32
    %c0_i32_2 = arith.constant 0 : i32
    return %c0_i32, %c0_i32_0, %c0_i32_1 : i32, i32, i32
  }
  func.func @transform_10(%arg0: i32) -> (i32, i32, i32) {
    %c0_i32 = arith.constant 0 : i32
    %c0_i32_0 = arith.constant 0 : i32
    %c0_i32_1 = arith.constant 0 : i32
    %c0_i32_2 = arith.constant 0 : i32
    return %c0_i32, %c0_i32_0, %c0_i32_1 : i32, i32, i32
  }
  func.func @transform_11(%arg0: i32) -> (i32, i32, i32) {
    %c0_i32 = arith.constant 0 : i32
    %c0_i32_0 = arith.constant 0 : i32
    %c0_i32_1 = arith.constant 0 : i32
    %c0_i32_2 = arith.constant 0 : i32
    return %c0_i32, %c0_i32_0, %c0_i32_1 : i32, i32, i32
  }
  func.func @transform_12(%arg0: i32) -> (i32, i32, i32) {
    %c0_i32 = arith.constant 0 : i32
    %c0_i32_0 = arith.constant 0 : i32
    %c0_i32_1 = arith.constant 0 : i32
    %c0_i32_2 = arith.constant 0 : i32
    return %c0_i32, %c0_i32_0, %c0_i32_1 : i32, i32, i32
  }
  func.func @transform_13(%arg0: i32) -> (i32, i32, i32) {
    %c0_i32 = arith.constant 0 : i32
    %c0_i32_0 = arith.constant 0 : i32
    %c0_i32_1 = arith.constant 0 : i32
    %c0_i32_2 = arith.constant 0 : i32
    return %c0_i32, %c0_i32_0, %c0_i32_1 : i32, i32, i32
  }
  func.func @transform_14(%arg0: i32) -> (i32, i32, i32) {
    %c0_i32 = arith.constant 0 : i32
    %c0_i32_0 = arith.constant 0 : i32
    %c0_i32_1 = arith.constant 0 : i32
    %c0_i32_2 = arith.constant 0 : i32
    return %c0_i32, %c0_i32_0, %c0_i32_1 : i32, i32, i32
  }
  func.func @transform_15(%arg0: i32) -> (i32, i32, i32) {
    %c0_i32 = arith.constant 0 : i32
    %c0_i32_0 = arith.constant 0 : i32
    %c0_i32_1 = arith.constant 0 : i32
    %c0_i32_2 = arith.constant 0 : i32
    return %c0_i32, %c0_i32_0, %c0_i32_1 : i32, i32, i32
  }
  func.func @transform_16(%arg0: i32) -> (i32, i32, i32) {
    %c0_i32 = arith.constant 0 : i32
    %c0_i32_0 = arith.constant 0 : i32
    %c0_i32_1 = arith.constant 0 : i32
    %c0_i32_2 = arith.constant 0 : i32
    return %c0_i32, %c0_i32_0, %c0_i32_1 : i32, i32, i32
  }
  func.func @transform_17(%arg0: i32) -> (i32, i32) {
    %c0_i32 = arith.constant 0 : i32
    %c0_i32_0 = arith.constant 0 : i32
    return %arg0, %c0_i32 : i32, i32
  }
}

</mosaic_0001>

<bundles_post_ra>
// kernel: tpu_custom_call.1
= control target key start
LH: loop header
LB: loop body
LE: loop exit
PB: predicated region body
PF: predicated region fallthrough
CT: control target
= control target key end

     0   :  { %s5466_s0 = inlined_call_operand.hbm [shape: bf16[16,32], index: 0, kind: input, shape index: {}]   ;;  %s5467_s1 = inlined_call_operand.hbm [shape: f32[8,32], index: 1, kind: input, shape index: {}]   ;;  %s5468_s2 = inlined_call_operand.vmem [shape: f32[2,1,8], index: 2, kind: input, shape index: {}]   ;;  %s5469_s3 = inlined_call_operand.vmem [shape: bf16[2,32,32], index: 3, kind: input, shape index: {}]   ;;  %s5470_s4 = inlined_call_operand.vmem [shape: f32[2,1,32], index: 4, kind: input, shape index: {}]   ;;  %s5471_s5 = inlined_call_operand.vmem [shape: bf16[2,32,32], index: 5, kind: input, shape index: {}]   ;;  %s5472_s6 = inlined_call_operand.vmem [shape: f32[2,1,32], index: 6, kind: input, shape index: {}]   ;;  %s5473_s7 = inlined_call_operand.vmem [shape: bf16[2,32,32], index: 7, kind: input, shape index: {}]   ;;  %s5474_s8 = inlined_call_operand.vmem [shape: f32[2,1,32], index: 8, kind: input, shape index: {}]   ;;  %s5475_s9 = inlined_call_operand.hbm [shape: bf16[2,32,32], index: 9, kind: input, shape index: {}]   ;;  %s5476_s10 = inlined_call_operand.vmem [shape: f32[2,1,32], index: 10, kind: input, shape index: {}]   ;;  %s5477_s11 = inlined_call_operand.vmem [shape: f32[2,1,32], index: 11, kind: input, shape index: {}]   ;;  %s5478_s12 = inlined_call_operand.vmem [shape: f32[2,1,32], index: 12, kind: input, shape index: {}]   ;;  %s5479_s13 = inlined_call_operand.hbm [shape: bf16[2,32,64], index: 13, kind: input, shape index: {}]   ;;  %s5480_s14 = inlined_call_operand.vmem [shape: f32[2,1,64], index: 14, kind: input, shape index: {}]   ;;  %s5481_s15 = inlined_call_operand.vmem [shape: bf16[2,64,32], index: 15, kind: input, shape index: {}]   ;;  %s5482_s16 = inlined_call_operand.vmem [shape: f32[2,1,32], index: 16, kind: input, shape index: {}]   ;;  %s5483_s17 = inlined_call_operand.hbm [shape: f32[16,32], index: 17, kind: output, shape index: {}]  }
   0x1   :  { %5509 = sst [smem:[#allocation17_spill]] %s5466_s0 }
   0x2   :  { %5510 = sst [smem:[#allocation18_spill]] %s5467_s1 }
   0x3   :  { %5511 = sst [smem:[#allocation19_spill]] %s5468_s2 }
   0x4   :  { %5512 = sst [smem:[#allocation20_spill]] %s5475_s9 }
   0x5   :  { %5513 = sst [smem:[#allocation21_spill]] %s5477_s11 }
   0x6   :  { %5514 = sst [smem:[#allocation22_spill]] %s5478_s12 }
   0x7   :  { %5515 = sst [smem:[#allocation23_spill]] %s5480_s14 }
   0x8   :  { %5516 = sst [smem:[#allocation24_spill]] %s5481_s15 }
   0x9   :  { %5517 = sst [smem:[#allocation25_spill]] %s5482_s16 }
   0xa   :  { %5518 = sst [smem:[#allocation26_spill]] %s5483_s17 }
   0xb   :  { %22 = vsyncpa [#allocation3], 0 }
   0xc   :  { %24 = vsyncpa [#allocation3 + $0x1], 0 }
   0xd   :  { %25 = vsyncpa [#allocation6], 0 }
   0xe   :  { %26 = vsyncpa [#allocation9], 0 }
   0xf   :  { %27 = vsyncpa [#allocation4], 0 }
  0x10   :  { %29 = vsyncpa [#allocation4 + $0x1], 0  ;;  %s4693_s24 = smov 0   ;;  %s4695_s25 = smov 0  }
  0x11   :  { %s4697_s26 = smov 0   ;;  %s4699_s27 = smov 0  }
  0x12 LB: > { %5519 = sst [smem:[#allocation15_spill]] %s4571_s24  ;;  %s4714_s28 = sadd.s32 4294967295, %s4583_s27   ;;  %s4583_s27 = sphi %s4699_s27, %s5560_s27   ;;  %s4579_s26 = sphi %s4697_s26, %s5559_s26   ;;  %s4575_s25 = sphi %s4695_s25, %s5558_s25   ;;  %s4571_s24 = sphi %s4693_s24, %s5557_s24  }
  0x13   : > { %s3841_s29 = sadd.s32 4294967294, %s4583_s27   ;;  %p55_p0 = scmp.ne.s32.totalorder %s4575_s25, %s4571_s24 }
  0x14   : > { %p5492_p1 = scmp.eq.s32.totalorder %s4714_s28, 0  ;;  %p426_p3 = scmp.eq.s32.totalorder %s3841_s29, 1 }
  0x15   : > { %p3842_p5 = scmp.ge.s32.totalorder %s4583_s27, 1  ;;  %p433_p7 = scmp.lt.s32.totalorder %s4583_s27, 3 }
  0x16   : > { %p4723_p4 = por %p5492_p1, %p55_p0  ;;  %p4728_p6 = por %p426_p3, %p55_p0 }
  0x17   : > { %p4733_p8 = pnand %p3842_p5, %p433_p7  ;;  %s4585_s19 = smov [#allocation5]  }
  0x18   : > { %s5520_s0 = scalar_select %p4723_p4, 1, 0 }
  0x19   : > { %s5521_s30 = scalar_select %p4728_p6, 1, 0 }
  0x1a   : > { %s5523_s18 = scalar_select %p4733_p8, 1, 0 }
  0x1b   : > { %5522 = sst [smem:[#allocation16_spill]] %s5521_s30  ;;  %s446_s1 = sshll.u32 %s4585_s19, 4  ;;  %s447_s1 = int_to_ptr.vmem [resolvable:$true] %s446_s1 }
  0x1c   : > { %p4252_p10 = pneg %p4733_p8  ;;  %s4586_s20 = smov [#allocation7]  }
  0x1d   : > { %s474_s21 = sshll.u32 %s4586_s20, 4  ;;  %s4587_s23 = smov [#allocation8]   ;;  %s4746_s21 = int_to_ptr.vmem [resolvable:$true] %s474_s21 }
  0x1e   : > { %p4742_p11 = pnand %p4252_p10, %p5492_p1  ;;  %s4748_s29 = sshll.u32 %s4587_s23, 4  ;;  %s497_s29 = int_to_ptr.vmem [resolvable:$true] %s4748_s29 }
  0x1f   : > { %s5525_s19 = sld [smem:[#allocation18_spill]] }
  0x20   : > { %p4758_p13 = pneg %p4742_p11 }
  0x25   : > { %s4395_s17 = scalar_lea.hbm %s5525_s19, 128 }
  0x26   : > { %p4396_p12 = scmp.ne.s32.totalorder %s5525_s19, %s4395_s17  ;;  %p4402_p5 = scmp.lt.u32.totalorder %s4395_s17, %s5525_s19 }
  0x28   : > { %p4398_p0 = pnand %p4758_p13, %p4396_p12 }
  0x2a   : > { %p4399_p3 = pneg %p4398_p0 }
  0x2c   : > { %p4404_p7 = pnand %p4402_p5, %p4399_p3 }
  0x2e   : > { %4407 = shalt.err (!%p4404_p7)
}
  0x2f   : > { %s4408_s24 = scalar_lea.vmem %s447_s1, 128  ;;  %p4416_p2 = scmp.lt.s32.totalorder %s447_s1, %s447_s1 }
  0x30   : > { %p4409_p10 = scmp.ne.s32.totalorder %s447_s1, %s4408_s24  ;;  %p4417_p6 = scmp.lt.s32.totalorder %s4408_s24, %s4408_s24 }
  0x32   : > { %p4411_p9 = pnand %p4409_p10, %p4758_p13  ;;  %p4418_p4 = por %p4417_p6, %p4416_p2 }
  0x34   : > { %p4412_p1 = pneg %p4411_p9 }
  0x36   : > { %p4419_p8 = pnand %p4418_p4, %p4412_p1 }
  0x38   : > { %4422 = shalt.err (!%p4419_p8)
}
  0x39   : > { %4255 = dma.hbm_to_vmem [thread:$0]  (!%p4742_p11), %s5525_s19, 128, %s447_s1, [#allocation6]  }
  0x3a   : > { %s5527_s9 = sld [smem:[#allocation20_spill]] }
  0x40   : > { %s4423_s30 = scalar_lea.hbm %s5527_s9, 512 }
  0x41   : > { %p4424_p9 = scmp.ne.s32.totalorder %s5527_s9, %s4423_s30  ;;  %p4430_p1 = scmp.lt.u32.totalorder %s4423_s30, %s5527_s9 }
  0x43   : > { %p4426_p12 = pnand %p4424_p9, %p4758_p13 }
  0x45   : > { %p4427_p2 = pneg %p4426_p12 }
  0x47   : > { %p4432_p4 = pnand %p4430_p1, %p4427_p2 }
  0x49   : > { %4435 = shalt.err (!%p4432_p4)
}
  0x4a   : > { %s4436_s1 = scalar_lea.vmem %s4746_s21, 512  ;;  %p4444_p3 = scmp.lt.s32.totalorder %s4746_s21, %s4746_s21 }
  0x4b   : > { %p4437_p6 = scmp.ne.s32.totalorder %s4746_s21, %s4436_s1  ;;  %p4445_p5 = scmp.lt.s32.totalorder %s4436_s1, %s4436_s1 }
  0x4d   : > { %p4439_p8 = pnand %p4437_p6, %p4758_p13  ;;  %p4446_p7 = por %p4445_p5, %p4444_p3 }
  0x4f   : > { %p4440_p0 = pneg %p4439_p8 }
  0x51   : > { %p4447_p10 = pnand %p4446_p7, %p4440_p0 }
  0x53   : > { %4450 = shalt.err (!%p4447_p10)
}
  0x54   : > { %s4588_s11 = smov 64   ;;  %s4589_s15 = smov 4  }
  0x55   : > { %4258 = dma.hbm_to_vmem [thread:$0]  (!%p4742_p11), %s5527_s9, 512, %s4746_s21, [#allocation6], %s4588_s11, %s4588_s11, %s4589_s15  }
  0x56   : > { %s4451_s30 = scalar_lea.hbm %s5479_s13, 512 }
  0x57   : > { %p4452_p9 = scmp.ne.s32.totalorder %s5479_s13, %s4451_s30  ;;  %p4458_p1 = scmp.lt.u32.totalorder %s4451_s30, %s5479_s13 }
  0x59   : > { %p4454_p12 = pnand %p4452_p9, %p4758_p13 }
  0x5b   : > { %p4455_p2 = pneg %p4454_p12 }
  0x5d   : > { %p4460_p4 = pnand %p4458_p1, %p4455_p2 }
  0x5f   : > { %4463 = shalt.err (!%p4460_p4)
}
  0x60   : > { %s4464_s14 = scalar_lea.vmem %s497_s29, 512  ;;  %p4472_p3 = scmp.lt.s32.totalorder %s497_s29, %s497_s29 }
  0x61   : > { %p4465_p6 = scmp.ne.s32.totalorder %s497_s29, %s4464_s14  ;;  %p4473_p5 = scmp.lt.s32.totalorder %s4464_s14, %s4464_s14 }
  0x63   : > { %p4467_p8 = pnand %p4465_p6, %p4758_p13  ;;  %p4474_p7 = por %p4473_p5, %p4472_p3 }
  0x65   : > { %p4468_p0 = pneg %p4467_p8 }
  0x67   : > { %p4475_p10 = pnand %p4474_p7, %p4468_p0 }
  0x69   : > { %4478 = shalt.err (!%p4475_p10)
}
  0x6a   : > { %4261 = dma.hbm_to_vmem [thread:$0]  (!%p4742_p11), %s5479_s13, 512, %s497_s29, [#allocation9], %s4588_s11, %s4588_s11, %s4589_s15  }
  0x6b   : > { %s4817_s19 = sadd.s32 1, %s4583_s27   ;;  %s42_s22 = sadd.s32 1, %s4579_s26 }
  0x6c   : > { %s39_s20 = ssub.s32 %s4583_s27, %s4817_s19  ;;  %p49_p9 = scmp.ne.s32.totalorder %s4579_s26, %s4575_s25 }
  0x6d   : > { %p40_p13 = scmp.eq.s32.totalorder %s39_s20, 0  ;;  %p50_p12 = scmp.eq.s32.totalorder %s4583_s27, 0 }
  0x6e   : > { %p4273_p2 = scmp.lt.s32.totalorder %s4583_s27, 2  ;;  %p5528_p4 = scmp.eq.s32.totalorder %s4714_s28, 1 }
  0x6f   : > { %s4827_s12 = scalar_select %p40_p13, %s4579_s26, %s42_s22  }
  0x70   : > { %p51_p1 = por %p50_p12, %p49_p9  ;;  %p4831_p6 = por %p5528_p4, %p49_p9 }
  0x71   : > { %s519_s30 = sand.u32 1, %s4579_s26   ;;  %s3848_s23 = sshll.u32 %s4583_s27, 6 }
  0x72   : > { %s3847_s29 = sshll.u32 %s519_s30, 2  ;;  %s5530_s24 = sld [smem:[#allocation17_spill]] }
  0x73   : > { %s523_s21 = scalar_lea.vmem [#allocation2], %s3847_s29  ;;  %p4842_p11 = pnand %p4273_p2, %p51_p1 }
  0x74   : > { %s530_s16 = sshll.u32 %s523_s21, 4  ;;  %s520_s22 = scalar_lea.sflag [#allocation3], %s519_s30  ;;  %s4846_s16 = int_to_ptr.vmem [resolvable:$true] %s530_s16 }
  0x75   : > { %p4481_p0 = pneg %p4842_p11 }
  0x78   : > { %s5531_s1 = smov %s5530_s24  ;;  %s4840_s14 = scalar_lea.hbm %s5530_s24, %s3848_s23 }
  0x79   : > { %s4479_s9 = scalar_lea.hbm %s4840_s14, 64  ;;  %s4484_s11 = scalar_lea.hbm %s5531_s1, 128 }
  0x7a   : > { %p4480_p8 = scmp.ne.s32.totalorder %s4840_s14, %s4479_s9  ;;  %p4485_p7 = scmp.lt.u32.totalorder %s4840_s14, %s5531_s1 }
  0x7b   : > { %p4486_p10 = scmp.lt.u32.totalorder %s4484_s11, %s4479_s9  ;;  %p4488_p9 = scmp.lt.u32.totalorder %s4479_s9, %s4840_s14 }
  0x7c   : > { %p4482_p3 = pnand %p4481_p0, %p4480_p8 }
  0x7d   : > { %p4487_p13 = por %p4486_p10, %p4485_p7 }
  0x7e   : > { %p4483_p5 = pneg %p4482_p3 }
  0x7f   : > { %p4489_p12 = por %p4488_p9, %p4487_p13 }
  0x81   : > { %p4490_p2 = pnand %p4489_p12, %p4483_p5 }
  0x83   : > { %4493 = shalt.err (!%p4490_p2)
}
  0x84   : > { %s4494_s30 = scalar_lea.vmem %s4846_s16, 64  ;;  %s4590_s21 = smov [#allocation2]  }
  0x85   : > { %p4495_p1 = scmp.ne.s32.totalorder %s4846_s16, %s4494_s30  ;;  %s4499_s23 = sshll.u32 %s4590_s21, 4  ;;  %s4500_s23 = int_to_ptr.vmem [resolvable:$false] %s4499_s23 }
  0x86   : > { %s4501_s29 = scalar_lea.vmem %s4500_s23, 128  ;;  %p4502_p3 = scmp.lt.s32.totalorder %s4846_s16, %s4500_s23 }
  0x87   : > { %p4497_p4 = pnand %p4495_p1, %p4481_p0  ;;  %p4503_p7 = scmp.lt.s32.totalorder %s4501_s29, %s4494_s30 }
  0x89   : > { %p4498_p8 = pneg %p4497_p4  ;;  %p4504_p10 = por %p4503_p7, %p4502_p3 }
  0x8b   : > { %p4505_p13 = pnand %p4504_p10, %p4498_p8 }
  0x8d   : > { %4508 = shalt.err (!%p4505_p13)
}
  0x8e   : > { %4265 = dma.hbm_to_vmem [thread:$0]  (!%p4842_p11), %s4840_s14, 64, %s4846_s16, %s520_s22  }
  0x8f   : > { %p5533_p5 = scmp.ne.s32.totalorder %s5523_s18, 0 }
  0x90   : > { %s4876_s9 = sand.u32 (!%p5533_p5), 1, %s4575_s25   ;;  %p5534_p0 = scmp.ne.s32.totalorder (!%p5533_p5), %s5520_s0, 0 }
  0x91   : > { %545 = sbr.rel (%p5533_p5) target bundleno = 5366 (0x14f6), region = 88  ;;  %s3850_s11 = sshll.u32 (!%p5533_p5), %s4876_s9, 2 }
  0x92   : > { %s548_s15 = scalar_lea.sflag (!%p5533_p5), [#allocation3], %s4876_s9  ;;  %s551_s24 = scalar_lea.vmem (!%p5533_p5), [#allocation2], %s3850_s11 }
  0x98   : > { %4554 = dma.done.wait (%p5534_p0), %s548_s15, 64  }
  0x99   : > { %4556 = vsyncadd (%p5534_p0), %s548_s15, 4294967232  ;;  %p5535_p9 = scmp.eq.s32.totalorder %s4714_s28, 0 }
  0x9b   : > { %4558 = dma.done.wait (%p5535_p9), [#allocation6], 640   ;;  %p5536_p11 = pmov %p5535_p9 }
  0x9c   : > { %p5537_p12 = pmov %p5535_p9 }
  0x9d   : > { %4560 = vsyncadd (%p5536_p11), [#allocation6], 4294966656 }
  0x9e   : > { %4562 = dma.done.wait (%p5537_p12), [#allocation9], 512   ;;  %p5538_p2 = pmov %p5535_p9 }
  0x9f   : > { %v4591_v0 = vmov 0.0   ;;  %vm4592_vm0 = vmmov 0   ;;  %v4326_v1 = vld [vmem:[%s5469_s3] sm:$0xff]   ;;  %v4327_v2 = vld [vmem:[%s5469_s3 + $0x8] sm:$0xff]   ;;  %vm668_vm1 = vcmask 261120   ;;  %s5503_s0 = smov 120   ;;  %v842_v30 = vlaneseq }
  0xa0   : > { %4564 = vsyncadd (%p5538_p2), [#allocation9], 4294966784  ;;  %4036 = vmatprep.subr.bf16.mxu1 %v4591_v0  ;;  %4040 = vmatprep.mubr.msk.bf16.mxu1 %vm4592_vm0, %v4591_v0  ;;  %v621_v3 = vld [vmem:[%s551_s24] sm:$0xf]  ;;  %v624_v5 = vld [vmem:[#allocation5] sm:$0xff]  ;;  %s5501_s24 = smov 104  }
  0xa1   : > { %4052 = vmatprep.subr.bf16.mxu0 %v4591_v0  ;;  %4056 = vmatprep.mubr.msk.bf16.mxu0 %vm4592_vm0, %v4591_v0  ;;  %v622_v4 = vunpack.c.l.bf16 %v621_v3  ;;  %v4328_v7 = vld [vmem:[%s5471_s5] sm:$0xff]   ;;  %v4329_v10 = vld [vmem:[%s5471_s5 + $0x8] sm:$0xff]   ;;  %s5505_s18 = smov 112   ;;  %v4596_v28 = vmov 1983009808   ;;  %v843_v34 = vshrl.u32 %v842_v30, 7 }
  0xa2   : > { %4037 = vmatpush3.bf16.msra.mxu1 %v4326_v1  ;;  %v3855_v15 = vld [vmem:[%s5470_s4] ss:$0 sm:$0xff]  ;;  %v4331_v27 = vld [vmem:[%s5473_s7 + $0x8] sm:$0xff]   ;;  %v840_v29 = vunpack.c.l.s4 %v4596_v28  ;;  %v4597_v31 = vmov 1934713408   ;;  %v4598_v50 = vmov 0  }
  0xa3   : > { %4038 = vmatprep.subr.bf16.mxu1 %v4591_v0  ;;  %v623_v6 = vmul.f32 5.656854, %v622_v4  ;;  %v3859_v16 = vld [vmem:[%s5472_s6] ss:$0 sm:$0xff]  ;;  %v857_v32 = vunpack.c.l.s4 %v4597_v31  ;;  %vm1342_vm2 = vcmask 64512   ;;  %p617_p1 = scmp.lt.s32.totalorder %s4714_s28, 1 }
  0xa4   : > { %v4330_v26 = vld [vmem:[%s5473_s7] sm:$0xff]   ;;  %v841_v33 = vunpack.c.0.s8 %v840_v29  ;;  %s5539_s2 = sld [smem:[#allocation19_spill]]  ;;  %vm1578_vm3 = vcmask 1043456   ;;  %s5500_s14 = smov 16   ;;  %vm1909_vm4 = vcmask 130048   ;;  %vm1911_vm5 = vcmask 195584  }
  0xa5   : > { %v4908_v8 = vadd.f32 %v624_v5, %v623_v6  ;;  %4053 = vmatpush3.bf16.msra.mxu0 %v4330_v26  ;;  %v858_v35 = vunpack.c.0.s8 %v857_v32  ;;  %s618_s30 = scalar_select %p617_p1, %s4714_s28, 1  ;;  %vm2112_vm6 = vcmask 523264  }
  0xa6   : > { %4039 = vmatpush3.bf16.msra.mxu1 %v4327_v2  ;;  %4054 = vmatprep.subr.bf16.mxu0 %v4591_v0  ;;  %v4947_v36 = vsub.s32 %v841_v33, %v843_v34  ;;  %s5499_s16 = smov 8   ;;  %s5498_s20 = smov 24  }
  0xa7   : > { %4044 = vmatprep.subr.bf16.mxu1 %v4591_v0  ;;  %v649_v9 = vpack.c.bf16 %v4908_v8, %v4908_v8  ;;  %v4950_v40 = vsub.s32 %v858_v35, %v843_v34  ;;  %s5540_s11 = sld [smem:[#allocation24_spill]]  ;;  %s5541_s23 = sld [smem:[#allocation21_spill]] }
  0xa8   : > { %s5546_s1 = smov 112   ;;  %s5551_s15 = smov 24  }
  0xa9   : > { %4041 = vmatmul.mubr.msk.bf16.vlgmr.msra.gmra.mrb[0].mxu1 %vm668_vm1, %v649_v9  ;;  %4055 = vmatpush3.bf16.msra.mxu0 %v4331_v27  ;;  %s3854_s22 = sshll.u32 %s4876_s9, 3 }
  0xaa   : > { %4045 = vmatpush3.bf16.msra.mxu1 %v4328_v7  ;;  %4048 = vmatprep.mubr.msk.bf16.mxu1 %vm4592_vm0, %v4591_v0  ;;  %s5016_s29 = scalar_lea.vmem %s5539_s2, %s618_s30  ;;  %s5545_s30 = sld [smem:[#allocation25_spill]] }
  0xab   : > { %4046 = vmatprep.subr.bf16.mxu1 %v4591_v0  ;;  %4066 = vmatprep.subr.bf16.mxu0 %v4591_v0 }
  0xac   : > { %4057 = vmatmul.mubr.msk.bf16.vlgmr.msra.gmra.mrb[0].mxu0 %vm668_vm1, %v649_v9 }
  0xad   : > { %4068 = vmatprep.mubr.msk.bf16.mxu0 %vm4592_vm0, %v4591_v0 }
  0xae   : > { %4047 = vmatpush3.bf16.msra.mxu1 %v4329_v10 }
  0xaf   : > { %4060 = vmatprep.subr.bf16.mxu1 %v4591_v0 }
  0xb1   : > { %4049 = vmatmul.mubr.msk.bf16.vlgmr.msra.gmra.mrb[4].mxu1 %vm668_vm1, %v649_v9 }
  0xb2   : > { %4062 = vmatprep.mubr.msk.bf16.mxu1 %vm4592_vm0, %v4591_v0 }
 0x17c   : > { %v706_v11 = vpop.f32.mrb[0].mxu1 }
 0x17d   : > { %v4042_v12 = vpop.f32.mrb[1].mxu1  ;;  %v707_v17 = vadd.f32 %v3855_v15, %v706_v11 }
 0x17e   : > { %v709_v13 = vpop.f32.mrb[2].mxu1 }
 0x17f   : > { %v4043_v14 = vpop.f32.mrb[3].mxu1  ;;  %v712_v22 = vmul.f32 0.35355338, %v707_v17 }
 0x181   : > { %v713_v25 = vpack.c.bf16 %v712_v22, %v712_v22 }
 0x183   : > { %v845_v57 = vrot.slane %v713_v25, %v4947_v36 }
 0x184   : > { %v766_v18 = vpop.f32.mrb[4].mxu1 }
 0x185   : > { %v767_v19 = vadd.f32 %v3859_v16, %v766_v18  ;;  %v4050_v20 = vpop.f32.mrb[5].mxu1 }
 0x186   : > { %v769_v21 = vpop.f32.mrb[6].mxu1 }
 0x187   : > { %v772_v23 = vpack.c.bf16 %v767_v19, %v767_v19  ;;  %v4051_v24 = vpop.f32.mrb[7].mxu1 }
 0x189   : > { %1005 = vrot.lane.b32.xlu1 %v772_v23, %s5501_s24  ;;  %1001 = vrot.lane.b32.xlu0 %v772_v23, %s5503_s0  ;;  %v1013_v49 = vrot.slane %v772_v23, %v4947_v36 }
 0x18d   : > { %833 = vrot.lane.b32.xlu1 %v713_v25, %s5503_s0  ;;  %1003 = vrot.lane.b32.xlu0 %v772_v23, %s5505_s18 }
 0x191   : > { %837 = vrot.lane.b32.xlu1 %v713_v25, %s5501_s24  ;;  %835 = vrot.lane.b32.xlu0 %v713_v25, %s5505_s18 }
 0x1fb   : > { %v1006_v37 = vpop.permute.xlu1 %1005  ;;  %v1002_v38 = vpop.permute.xlu0 %1001 }
 0x1fc   : > { %v1055_v39 = vrot.slane %v1006_v37, %v4947_v36  ;;  %v1047_v41 = vrot.slane %v1002_v38, %v4947_v36 }
 0x1fe   : > { %v1056_v42 = vcombine.low %v1047_v41, %v1055_v39  ;;  %v1057_v43 = vcombine.high %v1047_v41, %v1055_v39 }
 0x1ff   : > { %v834_v44 = vpop.permute.xlu1 %833  ;;  %v1004_v45 = vpop.permute.xlu0 %1003 }
 0x200   : > { %v1064_v46 = vrot.slane %v1056_v42, %v4950_v40  ;;  %v1071_v47 = vrot.slane %v1057_v43, %v4950_v40  ;;  %v1021_v48 = vrot.slane %v1004_v45, %v4947_v36  ;;  %v879_v53 = vrot.slane %v834_v44, %v4947_v36 }
 0x202   : > { %v1072_v51 = vcombine.high %v1064_v46, %v4598_v50  ;;  %v1073_v52 = vcombine.high %v1071_v47, %v4598_v50  ;;  %v1022_v54 = vcombine.low %v1013_v49, %v1021_v48  ;;  %v1023_v55 = vcombine.high %v1013_v49, %v1021_v48 }
 0x203   : > { %v838_v56 = vpop.permute.xlu1 %837  ;;  %v836_v58 = vpop.permute.xlu0 %835  ;;  %v1079_v59 = vshrl.u32 %v1064_v46, 16  ;;  %v1095_v60 = vshrl.u32 %v1071_v47, 16 }
 0x204   : > { %v887_v61 = vrot.slane %v838_v56, %v4947_v36  ;;  %v853_v62 = vrot.slane %v836_v58, %v4947_v36  ;;  %v1087_v63 = vshrl.u32 %v1072_v51, 16  ;;  %v1103_v1 = vshrl.u32 %v1073_v52, 16 }
 0x205   : > { %v1030_v2 = vrot.slane %v1022_v54, %v4950_v40  ;;  %v1037_v3 = vrot.slane %v1023_v55, %v4950_v40 }
 0x206   : > { %v888_v4 = vcombine.low %v879_v53, %v887_v61  ;;  %v889_v5 = vcombine.high %v879_v53, %v887_v61  ;;  %v854_v6 = vcombine.low %v845_v57, %v853_v62  ;;  %v855_v7 = vcombine.high %v845_v57, %v853_v62 }
 0x207   : > { %v1038_v9 = vcombine.high %v1030_v2, %v4598_v50  ;;  %v1039_v10 = vcombine.high %v1037_v3, %v4598_v50  ;;  %v1076_v11 = vpack.i.b16 %v1064_v46, %v1030_v2  ;;  %v1078_v12 = vshrl.u32 %v1030_v2, 16 }
 0x208   : > { %v1092_v13 = vpack.i.b16 %v1071_v47, %v1037_v3  ;;  %v1094_v14 = vshrl.u32 %v1037_v3, 16  ;;  %v896_v15 = vrot.slane %v888_v4, %v4950_v40  ;;  %v903_v16 = vrot.slane %v889_v5, %v4950_v40 }
 0x209   : > { %v1080_v17 = vpack.i.b16 %v1079_v59, %v1078_v12  ;;  %v1084_v18 = vpack.i.b16 %v1072_v51, %v1038_v9  ;;  %v1086_v19 = vshrl.u32 %v1038_v9, 16  ;;  %v1100_v20 = vpack.i.b16 %v1073_v52, %v1039_v10 }
 0x20a   : > { %v1096_v21 = vpack.i.b16 %v1095_v60, %v1094_v14  ;;  %v1102_v22 = vshrl.u32 %v1039_v10, 16  ;;  %v1106_v23 = vcombine.low %v1076_v11, %v1092_v13  ;;  %v904_v24 = vcombine.high %v896_v15, %v4598_v50 }
 0x20b   : > { %v1088_v25 = vpack.i.b16 %v1087_v63, %v1086_v19  ;;  %v1114_v26 = vcombine.low %v1084_v18, %v1100_v20  ;;  %v905_v27 = vcombine.high %v903_v16, %v4598_v50  ;;  %v911_v31 = vshrl.u32 %v896_v15, 16 }
 0x20c   : > { %v1104_v28 = vpack.i.b16 %v1103_v1, %v1102_v22  ;;  %v1113_v29 = vrot.slane %v1106_v23, %v4947_v36  ;;  %v1131_v30 = vcombine.low %v1080_v17, %v1096_v21  ;;  %v919_v32 = vshrl.u32 %v904_v24, 16 }
 0x20d   : > { %v927_v33 = vshrl.u32 %v903_v16, 16  ;;  %v862_v34 = vrot.slane %v854_v6, %v4950_v40  ;;  %v869_v35 = vrot.slane %v855_v7, %v4950_v40  ;;  %v935_v38 = vshrl.u32 %v905_v27, 16 }
 0x20e   : > { %v1139_v37 = vcombine.low %v1088_v25, %v1104_v28  ;;  %v1121_v39 = vrot.slane %v1114_v26, %v4947_v36  ;;  %v1138_v41 = vrot.slane %v1131_v30, %v4947_v36 }
 0x20f   : > { %v870_v42 = vcombine.high %v862_v34, %v4598_v50  ;;  %v871_v43 = vcombine.high %v869_v35, %v4598_v50  ;;  %v908_v44 = vpack.i.b16 %v896_v15, %v862_v34  ;;  %v910_v45 = vshrl.u32 %v862_v34, 16 }
 0x210   : > { %v924_v46 = vpack.i.b16 %v903_v16, %v869_v35  ;;  %v926_v47 = vshrl.u32 %v869_v35, 16  ;;  %v1122_v48 = vcombine.low %v1113_v29, %v1121_v39  ;;  %v1146_v49 = vrot.slane %v1139_v37, %v4947_v36  ;;  %v825_v37 = vpop.f32.mrb[0].mxu0 }
 0x211   : > { %v912_v51 = vpack.i.b16 %v911_v31, %v910_v45  ;;  %v916_v52 = vpack.i.b16 %v904_v24, %v870_v42  ;;  %v918_v53 = vshrl.u32 %v870_v42, 16  ;;  %v932_v54 = vpack.i.b16 %v905_v27, %v871_v43  ;;  %v5019_v42 = vld [vmem:[%s5016_s29] ss:$0 sm:$0xff] }
 0x212   : > { %v928_v55 = vpack.i.b16 %v927_v33, %v926_v47  ;;  %v934_v56 = vshrl.u32 %v871_v43, 16  ;;  %v938_v57 = vcombine.low %v908_v44, %v924_v46  ;;  %v1129_v58 = vrot.slane %v1122_v48, %v4950_v40 }
 0x213   : > { %v920_v59 = vpack.i.b16 %v919_v32, %v918_v53  ;;  %v946_v60 = vcombine.low %v916_v52, %v932_v54  ;;  %v1147_v61 = vcombine.low %v1138_v41, %v1146_v49 }
 0x214   : > { %v936_v62 = vpack.i.b16 %v935_v38, %v934_v56  ;;  %v963_v63 = vcombine.low %v912_v51, %v928_v55  ;;  %v945_v1 = vrot.slane %v938_v57, %v4947_v36  ;;  %v1159_v5 = vshrl.u32 %v1129_v58, 16  ;;  %v4058_v38 = vpop.f32.mrb[1].mxu0 }
 0x215   : > { %v953_v2 = vrot.slane %v946_v60, %v4947_v36  ;;  %v1154_v3 = vrot.slane %v1147_v61, %v4950_v40  ;;  %v1130_v15 = vcombine.high %v1129_v58, %v4598_v50  ;;  %v828_v39 = vpop.f32.mrb[2].mxu0 }
 0x216   : > { %v971_v4 = vcombine.low %v920_v59, %v936_v62  ;;  %v970_v11 = vrot.slane %v963_v63, %v4947_v36  ;;  %v4059_v41 = vpop.f32.mrb[3].mxu0 }
 0x217   : > { %v954_v6 = vcombine.low %v945_v1, %v953_v2  ;;  %v1158_v7 = vpack.i.b16 %v1154_v3, %v1129_v58  ;;  %v1160_v9 = vshrl.u32 %v1154_v3, 16  ;;  %v1155_v10 = vcombine.high %v1154_v3, %v4598_v50 }
 0x218   : > { %v978_v12 = vrot.slane %v971_v4, %v4947_v36  ;;  %v1165_v22 = vshrl.u32 %v1130_v15, 16  ;;  %v3863_v4 = vld [vmem:[%s5474_s8] ss:$0 sm:$0xff] }
 0x219   : > { %v1347_v13 = vsel %vm1342_vm2, %v1158_v7, 0  ;;  %v1161_v14 = vpack.i.b16 %v1160_v9, %v1159_v5  ;;  %v961_v18 = vrot.slane %v954_v6, %v4950_v40  ;;  %v1166_v19 = vshrl.u32 %v1155_v10, 16 }
 0x21a   : > { %v979_v16 = vcombine.low %v970_v11, %v978_v12  ;;  %4061 = vmatpush3.bf16.xpose.msra.mxu1 %v1347_v13  ;;  %v1164_v21 = vpack.i.b16 %v1155_v10, %v1130_v15  ;;  %v826_v6 = vadd.f32 %v3863_v4, %v825_v37 }
 0x21b   : > { %v1393_v17 = vsel %vm1342_vm2, %v1161_v14, 0  ;;  %4072 = vmatprep.subr.bf16.mxu1 %v4591_v0  ;;  %v991_v25 = vshrl.u32 %v961_v18, 16  ;;  %v1167_v26 = vpack.i.b16 %v1166_v19, %v1165_v22  ;;  %v962_v31 = vcombine.high %v961_v18, %v4598_v50 }
 0x21c   : > { %4067 = vmatpush3.bf16.xpose.msra.mxu0 %v1393_v17  ;;  %v986_v20 = vrot.slane %v979_v16, %v4950_v40  ;;  %v1439_v27 = vsel %vm1342_vm2, %v1164_v21, 0  ;;  %v831_v7 = vpack.c.bf16 %v826_v6, %v826_v6 }
 0x21d   : > { %4078 = vmatprep.subr.bf16.mxu0 %v4591_v0  ;;  %v1485_v30 = vsel %vm1342_vm2, %v1167_v26, 0  ;;  %v997_v34 = vshrl.u32 %v962_v31, 16 }
 0x21e   : > { %v992_v23 = vshrl.u32 %v986_v20, 16  ;;  %v990_v24 = vpack.i.b16 %v986_v20, %v961_v18  ;;  %v987_v29 = vcombine.high %v986_v20, %v4598_v50  ;;  %v1181_v39 = vrot.slane %v831_v7, %v4947_v36 }
 0x220   : > { %v993_v28 = vpack.i.b16 %v992_v23, %v991_v25  ;;  %v998_v32 = vshrl.u32 %v987_v29, 16  ;;  %v996_v33 = vpack.i.b16 %v987_v29, %v962_v31 }
 0x221   : > { %4063 = vmatmul.mubr.msk.bf16.vlgmr.msra.gmra.mrb[8].mxu1 %vm1342_vm2, %v990_v24 }
 0x222   : > { %4073 = vmatpush3.bf16.xpose.msra.mxu1 %v1439_v27  ;;  %4074 = vmatprep.mubr.msk.bf16.mxu1 %vm4592_vm0, %v4591_v0  ;;  %v999_v35 = vpack.i.b16 %v998_v32, %v997_v34 }
 0x223   : > { %4069 = vmatmul.mubr.msk.bf16.vlgmr.msra.gmra.mrb[4].mxu0 %vm1342_vm2, %v993_v28  ;;  %4084 = vmatprep.subr.bf16.mxu1 %v4591_v0 }
 0x224   : > { %4079 = vmatpush3.bf16.xpose.msra.mxu0 %v1485_v30  ;;  %4080 = vmatprep.mubr.msk.bf16.mxu0 %vm4592_vm0, %v4591_v0 }
 0x225   : > { %4090 = vmatprep.subr.bf16.mxu0 %v4591_v0 }
 0x229   : > { %4075 = vmatmul.mubr.msk.bf16.vlgmr.msra.gmra.mrb[12].mxu1 %vm1342_vm2, %v996_v33 }
 0x22a   : > { %4086 = vmatprep.mubr.msk.bf16.mxu1 %vm4592_vm0, %v4591_v0 }
 0x22b   : > { %4081 = vmatmul.mubr.msk.bf16.vlgmr.msra.gmra.mrb[8].mxu0 %vm1342_vm2, %v999_v35 }
 0x22c   : > { %4092 = vmatprep.mubr.msk.bf16.mxu0 %vm4592_vm0, %v4591_v0 }
 0x2f4   : > { %v1383_v43 = vpop.f32.mrb[8].mxu1 }
 0x2f5   : > { %v1384_v44 = vadd.f32 %v5019_v42, %v1383_v43  ;;  %v4064_v45 = vpop.f32.mrb[9].mxu1 }
 0x2f6   : > { %v1386_v46 = vpop.f32.mrb[10].mxu1  ;;  %v1429_v47 = vpop.f32.mrb[4].mxu0 }
 0x2f7   : > { %v1430_v48 = vadd.f32 %v5019_v42, %v1429_v47  ;;  %v4065_v49 = vpop.f32.mrb[11].mxu1  ;;  %v4070_v51 = vpop.f32.mrb[5].mxu0  ;;  %v1527_v52 = vsel %vm1342_vm2, %v1384_v44, -inf }
 0x2f8   : > { %v1432_v53 = vpop.f32.mrb[6].mxu0  ;;  %1528 = vmax.xlane.f32.xlu0 %v1527_v52 }
 0x2f9   : > { %v4071_v54 = vpop.f32.mrb[7].mxu0  ;;  %v1530_v55 = vsel %vm1342_vm2, %v1430_v48, -inf }
 0x2fa   : > { %1531 = vmax.xlane.f32.xlu1 %v1530_v55 }
 0x2fc   : > { %v1475_v56 = vpop.f32.mrb[12].mxu1 }
 0x2fd   : > { %v1476_v57 = vadd.f32 %v5019_v42, %v1475_v56  ;;  %v4076_v58 = vpop.f32.mrb[13].mxu1 }
 0x2fe   : > { %v1478_v59 = vpop.f32.mrb[14].mxu1  ;;  %v1521_v60 = vpop.f32.mrb[8].mxu0 }
 0x2ff   : > { %v1522_v61 = vadd.f32 %v5019_v42, %v1521_v60  ;;  %v4077_v62 = vpop.f32.mrb[15].mxu1  ;;  %v4082_v63 = vpop.f32.mrb[9].mxu0  ;;  %v1533_v1 = vsel %vm1342_vm2, %v1476_v57, -inf }
 0x300   : > { %v1524_v2 = vpop.f32.mrb[10].mxu0  ;;  %1534 = vmax.xlane.f32.xlu0 %v1533_v1 }
 0x301   : > { %v4083_v3 = vpop.f32.mrb[11].mxu0  ;;  %v1536_v5 = vsel %vm1342_vm2, %v1522_v61, -inf }
 0x304   : > { %1537 = vmax.xlane.f32.xlu0 %v1536_v5 }
 0x30b   : > { %1169 = vrot.lane.b32.xlu1 %v831_v7, %s5503_s0 }
 0x385   : > { %v1529_v9 = vpop.xlane.xlu0 %1528 }
 0x386   : > { %v1539_v10 = vsub.f32 %v1384_v44, %v1529_v9 }
 0x387   : > { %v1532_v11 = vpop.xlane.xlu1 %1531 }
 0x388   : > { %v1543_v12 = vmul.f32 1.442695, %v1539_v10  ;;  %v1540_v13 = vsub.f32 %v1430_v48, %v1532_v11 }
 0x38a   : > { %4354 = vpow2.f32 %v1543_v12  ;;  %v1545_v14 = vmul.f32 1.442695, %v1540_v13 }
 0x38b   : > { %v1170_v29 = vpop.permute.xlu1 %1169 }
 0x38c   : > { %4356 = vpow2.f32 %v1545_v14  ;;  %v1215_v33 = vrot.slane %v1170_v29, %v4947_v36 }
 0x38d   : > { %v1535_v19 = vpop.xlane.xlu0 %1534 }
 0x38e   : > { %v1541_v21 = vsub.f32 %v1476_v57, %v1535_v19 }
 0x390   : > { %v1547_v23 = vmul.f32 1.442695, %v1541_v21 }
 0x391   : > { %v1538_v20 = vpop.xlane.xlu0 %1537 }
 0x392   : > { %v1542_v22 = vsub.f32 %v1522_v61, %v1538_v20  ;;  %4358 = vpow2.f32 %v1547_v23 }
 0x394   : > { %v5033_v15 = vpop.eup %4354  ;;  %v1549_v24 = vmul.f32 1.442695, %v1542_v22 }
 0x395   : > { %v1551_v16 = vsel %vm1342_vm2, %v5033_v15, 0.0 }
 0x396   : > { %v5037_v17 = vpop.eup %4356  ;;  %1552 = vadd.xlane.f32.xlu1 %v1551_v16  ;;  %4360 = vpow2.f32 %v1549_v24 }
 0x397   : > { %v1554_v18 = vsel %vm1342_vm2, %v5037_v17, 0.0 }
 0x398   : > { %1555 = vadd.xlane.f32.xlu0 %v1554_v18 }
 0x39c   : > { %v5043_v25 = vpop.eup %4358 }
 0x39d   : > { %v1557_v27 = vsel %vm1342_vm2, %v5043_v25, 0.0 }
 0x3a0   : > { %v5045_v26 = vpop.eup %4360 }
 0x3a1   : > { %v1560_v28 = vsel %vm1342_vm2, %v5045_v26, 0.0 }
 0x3a7   : > { %1173 = vrot.lane.b32.xlu1 %v831_v7, %s5501_s24  ;;  %s5543_s24 = sld [smem:[#allocation23_spill]] }
 0x3ad   : > { %s5544_s0 = smov %s5543_s24 }
 0x3ae   : > { %1171 = vrot.lane.b32.xlu0 %v831_v7, %s5505_s18  ;;  %s5547_s18 = smov 120  }
 0x3cb   : > { %1558 = vadd.xlane.f32.xlu1 %v1557_v27 }
 0x3cd   : > { %1561 = vadd.xlane.f32.xlu0 %v1560_v28 }
 0x423   : > { %v1553_v30 = vpop.xlane.xlu1 %1552 }
 0x424   : > { %4362 = vrcp.f32 %v1553_v30 }
 0x425   : > { %v1556_v31 = vpop.xlane.xlu0 %1555 }
 0x426   : > { %4364 = vrcp.f32 %v1556_v31 }
 0x427   : > { %v1174_v32 = vpop.permute.xlu1 %1173 }
 0x428   : > { %v1223_v34 = vrot.slane %v1174_v32, %v4947_v36 }
 0x429   : > { %v1172_v35 = vpop.permute.xlu0 %1171 }
 0x42a   : > { %v1224_v37 = vcombine.low %v1215_v33, %v1223_v34  ;;  %v1225_v38 = vcombine.high %v1215_v33, %v1223_v34  ;;  %v1189_v41 = vrot.slane %v1172_v35, %v4947_v36 }
 0x42c   : > { %v1232_v43 = vrot.slane %v1224_v37, %v4950_v40  ;;  %v1239_v44 = vrot.slane %v1225_v38, %v4950_v40  ;;  %v1190_v45 = vcombine.low %v1181_v39, %v1189_v41  ;;  %v1191_v46 = vcombine.high %v1181_v39, %v1189_v41 }
 0x42e   : > { %v1240_v47 = vcombine.high %v1232_v43, %v4598_v50  ;;  %v1241_v48 = vcombine.high %v1239_v44, %v4598_v50  ;;  %v1198_v49 = vrot.slane %v1190_v45, %v4950_v40  ;;  %v1205_v51 = vrot.slane %v1191_v46, %v4950_v40  ;;  %v4363_v14 = vpop.eup %4362 }
 0x42f   : > { %v1247_v52 = vshrl.u32 %v1232_v43, 16  ;;  %v1263_v53 = vshrl.u32 %v1239_v44, 16  ;;  %v1567_v27 = vmul.f32 %v4363_v14, %v5033_v15 }
 0x430   : > { %v1255_v54 = vshrl.u32 %v1240_v47, 16  ;;  %v1206_v55 = vcombine.high %v1198_v49, %v4598_v50  ;;  %v1207_v56 = vcombine.high %v1205_v51, %v4598_v50  ;;  %v1244_v57 = vpack.i.b16 %v1232_v43, %v1198_v49  ;;  %v4365_v20 = vpop.eup %4364 }
 0x431   : > { %v1271_v58 = vshrl.u32 %v1241_v48, 16  ;;  %v1246_v59 = vshrl.u32 %v1198_v49, 16  ;;  %v1260_v60 = vpack.i.b16 %v1239_v44, %v1205_v51  ;;  %v1262_v61 = vshrl.u32 %v1205_v51, 16 }
 0x432   : > { %v1252_v62 = vpack.i.b16 %v1240_v47, %v1206_v55  ;;  %v1254_v63 = vshrl.u32 %v1206_v55, 16  ;;  %v1268_v1 = vpack.i.b16 %v1241_v48, %v1207_v56  ;;  %v1270_v2 = vshrl.u32 %v1207_v56, 16 }
 0x433   : > { %v1248_v3 = vpack.i.b16 %v1247_v52, %v1246_v59  ;;  %v1264_v4 = vpack.i.b16 %v1263_v53, %v1262_v61  ;;  %v1274_v5 = vcombine.low %v1244_v57, %v1260_v60  ;;  %v1568_v32 = vmul.f32 %v4365_v20, %v5037_v17  ;;  %v4332_v20 = vld [vmem:[#allocation7] sm:$0xff]  }
 0x434   : > { %v1256_v6 = vpack.i.b16 %v1255_v54, %v1254_v63  ;;  %v1272_v7 = vpack.i.b16 %v1271_v58, %v1270_v2  ;;  %v1282_v9 = vcombine.low %v1252_v62, %v1268_v1  ;;  %v1571_v41 = vpack.c.bf16 %v1567_v27, %v1567_v27 }
 0x435   : > { %v1299_v10 = vcombine.low %v1248_v3, %v1264_v4  ;;  %v1281_v11 = vrot.slane %v1274_v5, %v4947_v36  ;;  %v1572_v44 = vpack.c.bf16 %v1568_v32, %v1568_v32 }
 0x436   : > { %v1307_v12 = vcombine.low %v1256_v6, %v1272_v7  ;;  %v1289_v13 = vrot.slane %v1282_v9, %v4947_v36 }
 0x437   : > { %v1306_v18 = vrot.slane %v1299_v10, %v4947_v36 }
 0x438   : > { %v1290_v16 = vcombine.low %v1281_v11, %v1289_v13  ;;  %v1314_v19 = vrot.slane %v1307_v12, %v4947_v36 }
 0x43a   : > { %v1297_v21 = vrot.slane %v1290_v16, %v4950_v40  ;;  %v1315_v22 = vcombine.low %v1306_v18, %v1314_v19 }
 0x43c   : > { %v1322_v23 = vrot.slane %v1315_v22, %v4950_v40  ;;  %v1298_v24 = vcombine.high %v1297_v21, %v4598_v50  ;;  %v1327_v29 = vshrl.u32 %v1297_v21, 16 }
 0x43e   : > { %v1326_v28 = vpack.i.b16 %v1322_v23, %v1297_v21  ;;  %v1328_v30 = vshrl.u32 %v1322_v23, 16  ;;  %v1323_v31 = vcombine.high %v1322_v23, %v4598_v50  ;;  %v1333_v33 = vshrl.u32 %v1298_v24, 16 }
 0x440   : > { %v1580_v34 = vsel %vm1578_vm3, %v1326_v28, 0  ;;  %v1329_v35 = vpack.i.b16 %v1328_v30, %v1327_v29  ;;  %v1332_v37 = vpack.i.b16 %v1323_v31, %v1298_v24  ;;  %v1334_v38 = vshrl.u32 %v1323_v31, 16 }
 0x441   : > { %4085 = vmatpush3.bf16.msra.mxu1 %v1580_v34 }
 0x442   : > { %v1626_v39 = vsel %vm1578_vm3, %v1329_v35, 0  ;;  %4096 = vmatprep.subr.bf16.mxu1 %v4591_v0  ;;  %v1335_v15 = vpack.i.b16 %v1334_v38, %v1333_v33  ;;  %v1672_v43 = vsel %vm1578_vm3, %v1332_v37, 0  ;;  %v4333_v35 = vld [vmem:[#allocation7 + $0x8] sm:$0xff]  }
 0x443   : > { %4091 = vmatpush3.bf16.msra.mxu0 %v1626_v39 }
 0x444   : > { %4087 = vmatmul.mubr.msk.bf16.vlgmr.msra.gmra.mrb[16].mxu1 %vm1342_vm2, %v1571_v41  ;;  %4102 = vmatprep.subr.bf16.mxu0 %v4591_v0  ;;  %v1718_v17 = vsel %vm1578_vm3, %v1335_v15, 0 }
 0x445   : > { %4097 = vmatpush3.bf16.msra.mxu1 %v1672_v43  ;;  %4098 = vmatprep.mubr.msk.bf16.mxu1 %vm4592_vm0, %v4591_v0 }
 0x446   : > { %4093 = vmatmul.mubr.msk.bf16.vlgmr.msra.gmra.mrb[12].mxu0 %vm1342_vm2, %v1572_v44  ;;  %4108 = vmatprep.subr.bf16.mxu1 %v4591_v0 }
 0x447   : > { %4103 = vmatpush3.bf16.msra.mxu0 %v1718_v17  ;;  %4104 = vmatprep.mubr.msk.bf16.mxu0 %vm4592_vm0, %v4591_v0 }
 0x448   : > { %4116 = vmatprep.subr.bf16.mxu0 %v4591_v0 }
 0x458   : > { %v1559_v45 = vpop.xlane.xlu1 %1558 }
 0x459   : > { %4366 = vrcp.f32 %v1559_v45 }
 0x45a   : > { %v1562_v46 = vpop.xlane.xlu0 %1561 }
 0x45b   : > { %4368 = vrcp.f32 %v1562_v46 }
 0x463   : > { %v4367_v47 = vpop.eup %4366 }
 0x464   : > { %v1569_v48 = vmul.f32 %v4367_v47, %v5043_v25 }
 0x465   : > { %v4369_v49 = vpop.eup %4368 }
 0x466   : > { %v1570_v51 = vmul.f32 %v4369_v49, %v5045_v26  ;;  %v1573_v52 = vpack.c.bf16 %v1569_v48, %v1569_v48 }
 0x468   : > { %4099 = vmatmul.mubr.msk.bf16.vlgmr.msra.gmra.mrb[20].mxu1 %vm1342_vm2, %v1573_v52  ;;  %v1574_v53 = vpack.c.bf16 %v1570_v51, %v1570_v51 }
 0x469   : > { %4112 = vmatprep.mubr.msk.bf16.mxu1 %vm4592_vm0, %v4591_v0  ;;  %4109 = vmatpush3.bf16.msra.mxu1 %v4332_v20 }
 0x46a   : > { %4105 = vmatmul.mubr.msk.bf16.vlgmr.msra.gmra.mrb[16].mxu0 %vm1342_vm2, %v1574_v53  ;;  %4110 = vmatprep.subr.bf16.mxu1 %v4591_v0 }
 0x46b   : > { %4120 = vmatprep.mubr.msk.bf16.mxu0 %vm4592_vm0, %v4591_v0 }
 0x46d   : > { %4111 = vmatpush3.bf16.msra.mxu1 %v4333_v35 }
 0x46e   : > { %4124 = vmatprep.subr.bf16.mxu1 %v4591_v0 }
 0x517   : > { %v1616_v54 = vpop.f32.mrb[16].mxu1 }
 0x518   : > { %v4088_v55 = vpop.f32.mrb[17].mxu1 }
 0x519   : > { %v1619_v56 = vpop.f32.mrb[18].mxu1  ;;  %v1662_v57 = vpop.f32.mrb[12].mxu0 }
 0x51a   : > { %v4089_v25 = vpop.f32.mrb[19].mxu1  ;;  %v4094_v58 = vpop.f32.mrb[13].mxu0 }
 0x51b   : > { %v1665_v59 = vpop.f32.mrb[14].mxu0 }
 0x51c   : > { %v4095_v26 = vpop.f32.mrb[15].mxu0 }
 0x53b   : > { %v1708_v60 = vpop.f32.mrb[20].mxu1 }
 0x53c   : > { %v1760_v61 = vcombine.low %v1616_v54, %v1708_v60  ;;  %v1761_v62 = vcombine.high %v1616_v54, %v1708_v60  ;;  %v4100_v63 = vpop.f32.mrb[21].mxu1 }
 0x53d   : > { %v1711_v1 = vpop.f32.mrb[22].mxu1  ;;  %v1754_v2 = vpop.f32.mrb[16].mxu0 }
 0x53e   : > { %v1776_v3 = vcombine.low %v1662_v57, %v1754_v2  ;;  %v1777_v4 = vcombine.high %v1662_v57, %v1754_v2  ;;  %v4101_v5 = vpop.f32.mrb[23].mxu1  ;;  %v4106_v6 = vpop.f32.mrb[17].mxu0  ;;  %v1768_v9 = vrot.slane %v1760_v61, %v4947_v36  ;;  %v1775_v10 = vrot.slane %v1761_v62, %v4947_v36  ;;  %v3878_v57 = vld [vmem:[%s5476_s10] ss:$0 sm:$0xff] }
 0x53f   : > { %v1757_v7 = vpop.f32.mrb[18].mxu0  ;;  %v4334_v5 = vld [vmem:[#allocation8] sm:$0xff]   ;;  %v4335_v6 = vld [vmem:[#allocation8 + $0x8] sm:$0xff]  }
 0x540   : > { %v1784_v11 = vrot.slane %v1776_v3, %v4947_v36  ;;  %v1791_v12 = vrot.slane %v1777_v4, %v4947_v36  ;;  %v4107_v13 = vpop.f32.mrb[19].mxu0  ;;  %4117 = vmatpush3.bf16.msra.mxu0 %v4334_v5  ;;  %v4337_v7 = vld [vmem:[%s5540_s11 + $0x8] sm:$0xff]   ;;  %v3912_v5 = vld [vmem:[%s5470_s4 + $0x1] ss:$0 sm:$0xff] }
 0x541   : > { %4118 = vmatprep.subr.bf16.mxu0 %v4591_v0  ;;  %v3882_v13 = vld [vmem:[%s5541_s23] ss:$0 sm:$0xff] }
 0x542   : > { %v1792_v14 = vcombine.low %v1768_v9, %v1784_v11  ;;  %v1793_v16 = vcombine.high %v1768_v9, %v1784_v11  ;;  %v1808_v18 = vcombine.low %v1775_v10, %v1791_v12  ;;  %v1809_v19 = vcombine.high %v1775_v10, %v1791_v12 }
 0x544   : > { %v1800_v21 = vrot.slane %v1792_v14, %v4950_v40  ;;  %v1807_v22 = vrot.slane %v1793_v16, %v4950_v40  ;;  %v1816_v23 = vrot.slane %v1808_v18, %v4950_v40  ;;  %v1823_v24 = vrot.slane %v1809_v19, %v4950_v40  ;;  %4119 = vmatpush3.bf16.msra.mxu0 %v4335_v6  ;;  %v3916_v6 = vld [vmem:[%s5472_s6 + $0x1] ss:$0 sm:$0xff] }
 0x545   : > { %4136 = vmatprep.subr.bf16.mxu0 %v4591_v0 }
 0x546   : > { %v1828_v27 = vcombine.low %v1800_v21, %v1807_v22  ;;  %v3876_v28 = vcombine.high %v1800_v21, %v1807_v22  ;;  %v1844_v29 = vcombine.low %v1816_v23, %v1823_v24  ;;  %v3877_v30 = vcombine.high %v1816_v23, %v1823_v24  ;;  %v4338_v21 = vld [vmem:[%s5540_s11 + $0x10] sm:$0xff]   ;;  %v4339_v22 = vld [vmem:[%s5540_s11 + $0x18] sm:$0xff]   ;;  %v3884_v23 = vld [vmem:[%s5543_s24] ss:$0 sm:$0xff]  ;;  %s5548_s24 = smov 104  }
 0x548   : > { %v1835_v31 = vrot.slane %v1828_v27, %v4947_v36  ;;  %v1843_v32 = vrot.slane %v3876_v28, %v4947_v36  ;;  %v1851_v33 = vrot.slane %v1844_v29, %v4947_v36  ;;  %v1859_v34 = vrot.slane %v3877_v30, %v4947_v36 }
 0x54a   : > { %v1861_v37 = vcombine.high %v1835_v31, %v1843_v32  ;;  %v1877_v38 = vcombine.high %v1851_v33, %v1859_v34  ;;  %v1860_v39 = vcombine.low %v1835_v31, %v1843_v32  ;;  %v1876_v41 = vcombine.low %v1851_v33, %v1859_v34  ;;  %v3888_v33 = vld [vmem:[%s5545_s30] ss:$0 sm:$0xff] }
 0x54c   : > { %v1875_v15 = vrot.slane %v1861_v37, %v4950_v40  ;;  %v1891_v43 = vrot.slane %v1877_v38, %v4950_v40  ;;  %v1868_v44 = vrot.slane %v1860_v39, %v4950_v40  ;;  %v1884_v17 = vrot.slane %v1876_v41, %v4950_v40 }
 0x54e   : > { %v1894_v45 = vcombine.low %v1875_v15, %v1891_v43  ;;  %v1893_v46 = vcombine.high %v1868_v44, %v1884_v17  ;;  %v1895_v47 = vcombine.high %v1875_v15, %v1891_v43  ;;  %v1892_v48 = vcombine.low %v1868_v44, %v1884_v17 }
 0x550   : > { %1901 = vrot.lane.b32.xlu1 %v1894_v45, %s5500_s14  ;;  %1897 = vrot.lane.b32.xlu0 %v1893_v46, %s5499_s16  ;;  %s5542_s14 = sld [smem:[#allocation22_spill]] }
 0x554   : > { %1905 = vrot.lane.b32.xlu1 %v1895_v47, %s5498_s20  ;;  %v4340_v47 = vld [vmem:[%s5469_s3 + $0x10] sm:$0xff]   ;;  %s5550_s20 = smov 8  }
 0x556   : > { %v3883_v16 = vld [vmem:[%s5542_s14] ss:$0 sm:$0xff] }
 0x5c2   : > { %v1902_v49 = vpop.permute.xlu1 %1901  ;;  %v1898_v51 = vpop.permute.xlu0 %1897 }
 0x5c3   : > { %v1908_v52 = vsel %vm1342_vm2, %v1892_v48, %v1898_v51  ;;  %v4341_v48 = vld [vmem:[%s5473_s7 + $0x10] sm:$0xff]   ;;  %v4343_v51 = vld [vmem:[%s5473_s7 + $0x18] sm:$0xff]  }
 0x5c4   : > { %v1910_v54 = vsel %vm1909_vm4, %v1908_v52, %v1902_v49  ;;  %v4342_v49 = vld [vmem:[%s5469_s3 + $0x18] sm:$0xff]  }
 0x5c6   : > { %v1906_v53 = vpop.permute.xlu1 %1905 }
 0x5c7   : > { %v1912_v55 = vsel %vm1911_vm5, %v1910_v54, %v1906_v53 }
 0x5c8   : > { %v1913_v56 = vpack.c.bf16 %v1912_v55, %v1912_v55 }
 0x5ca   : > { %4113 = vmatmul.mubr.msk.bf16.vlgmr.msra.gmra.mrb[24].mxu1 %vm668_vm1, %v1913_v56 }
 0x5cb   : > { %4132 = vmatprep.mubr.msk.bf16.mxu1 %vm4592_vm0, %v4591_v0 }
 0x69d   : > { %v1969_v25 = vpop.f32.mrb[24].mxu1 }
 0x69e   : > { %v1970_v58 = vadd.f32 %v3878_v57, %v1969_v25  ;;  %v4114_v59 = vpop.f32.mrb[25].mxu1 }
 0x69f   : > { %v1972_v26 = vpop.f32.mrb[26].mxu1 }
 0x6a0   : > { %v4115_v60 = vpop.f32.mrb[27].mxu1  ;;  %v1975_v61 = vadd.f32 %v1970_v58, %v4908_v8  ;;  %v4336_v8 = vld [vmem:[%s5540_s11] sm:$0xff]   ;;  %v4344_v58 = vld [vmem:[%s5471_s5 + $0x10] sm:$0xff]   ;;  %v4345_v26 = vld [vmem:[%s5471_s5 + $0x18] sm:$0xff]  }
 0x6a1   : > { %4125 = vmatpush3.bf16.msra.mxu1 %v4336_v8 }
 0x6a2   : > { %v1976_v62 = vsel %vm668_vm1, %v1975_v61, 0.0  ;;  %4126 = vmatprep.subr.bf16.mxu1 %v4591_v0 }
 0x6a3   : > { %1977 = vadd.xlane.f32.xlu0 %v1976_v62 }
 0x6a5   : > { %4127 = vmatpush3.bf16.msra.mxu1 %v4337_v7 }
 0x6a6   : > { %4128 = vmatprep.subr.bf16.mxu1 %v4591_v0 }
 0x6a9   : > { %4129 = vmatpush3.bf16.msra.mxu1 %v4338_v21 }
 0x6aa   : > { %4130 = vmatprep.subr.bf16.mxu1 %v4591_v0 }
 0x6ad   : > { %4131 = vmatpush3.bf16.msra.mxu1 %v4339_v22 }
 0x6ae   : > { %4152 = vmatprep.subr.bf16.mxu1 %v4591_v0 }
 0x730   : > { %v1978_v63 = vpop.xlane.xlu0 %1977 }
 0x731   : > { %v1980_v1 = vmul.f32 0.03125, %v1978_v63 }
 0x733   : > { %v1981_v2 = vsub.f32 %v1975_v61, %v1980_v1 }
 0x735   : > { %v1982_v3 = vmul.f32 %v1981_v2, %v1981_v2 }
 0x737   : > { %v1983_v4 = vsel %vm668_vm1, %v1982_v3, 0.0 }
 0x738   : > { %1984 = vadd.xlane.f32.xlu1 %v1983_v4 }
 0x7c5   : > { %v1985_v9 = vpop.xlane.xlu1 %1984 }
 0x7c6   : > { %v1986_v10 = vmul.f32 0.03125, %v1985_v9 }
 0x7c8   : > { %v1987_v11 = vadd.f32 1e-05, %v1986_v10 }
 0x7ca   : > { %4370 = vrsqrt.f32 %v1987_v11 }
 0x7d4   : > { %v4371_v12 = vpop.eup %4370 }
 0x7d5   : > { %v1989_v14 = vmul.f32 %v4371_v12, %v1981_v2 }
 0x7d7   : > { %v1996_v18 = vmul.f32 %v3882_v13, %v1989_v14 }
 0x7d9   : > { %v2003_v19 = vadd.f32 %v3883_v16, %v1996_v18 }
 0x7db   : > { %v2004_v20 = vpack.c.bf16 %v2003_v19, %v2003_v19 }
 0x7dd   : > { %4121 = vmatmul.mubr.msk.bf16.vlgmr.msra.gmra.mrb[20].mxu0 %vm668_vm1, %v2004_v20 }
 0x7de   : > { %4140 = vmatprep.mubr.msk.bf16.mxu0 %vm4592_vm0, %v4591_v0  ;;  %4137 = vmatpush3.bf16.msra.mxu0 %v4340_v47 }
 0x7df   : > { %4138 = vmatprep.subr.bf16.mxu0 %v4591_v0 }
 0x7e2   : > { %4139 = vmatpush3.bf16.msra.mxu0 %v4342_v49 }
 0x7e3   : > { %4144 = vmatprep.subr.bf16.mxu0 %v4591_v0 }
 0x8b0   : > { %v2065_v24 = vpop.f32.mrb[20].mxu0 }
 0x8b1   : > { %v2066_v27 = vadd.f32 %v3884_v23, %v2065_v24  ;;  %v4122_v28 = vpop.f32.mrb[21].mxu0 }
 0x8b2   : > { %v2068_v29 = vpop.f32.mrb[22].mxu0 }
 0x8b3   : > { %v2071_v30 = vmax.f32 %v2066_v27, 0.0  ;;  %v4123_v31 = vpop.f32.mrb[23].mxu0 }
 0x8b5   : > { %v2072_v32 = vpack.c.bf16 %v2071_v30, %v2071_v30 }
 0x8b7   : > { %4133 = vmatmul.mubr.msk.bf16.vlgmr.msra.gmra.mrb[28].mxu1 %vm2112_vm6, %v2072_v32 }
 0x8b8   : > { %4156 = vmatprep.mubr.msk.bf16.mxu1 %vm4592_vm0, %v4591_v0  ;;  %4153 = vmatpush3.bf16.msra.mxu1 %v4341_v48 }
 0x8b9   : > { %4154 = vmatprep.subr.bf16.mxu1 %v4591_v0 }
 0x8bc   : > { %4155 = vmatpush3.bf16.msra.mxu1 %v4343_v51 }
 0x8bd   : > { %4166 = vmatprep.subr.bf16.mxu1 %v4591_v0 }
 0x98a   : > { %v2150_v34 = vpop.f32.mrb[28].mxu1 }
 0x98b   : > { %v2151_v35 = vadd.f32 %v3888_v33, %v2150_v34  ;;  %v4134_v37 = vpop.f32.mrb[29].mxu1 }
 0x98c   : > { %v2153_v38 = vpop.f32.mrb[30].mxu1 }
 0x98d   : > { %v4135_v39 = vpop.f32.mrb[31].mxu1  ;;  %v2156_v41 = vadd.f32 %v2151_v35, %v2003_v19 }
 0x98f   : > { %v2157_v15 = vsel %vm668_vm1, %v2156_v41, 0.0 }
 0x990   : > { %2158 = vadd.xlane.f32.xlu0 %v2157_v15 }
 0xa1d   : > { %v2159_v43 = vpop.xlane.xlu0 %2158 }
 0xa1e   : > { %v2160_v44 = vmul.f32 0.03125, %v2159_v43 }
 0xa20   : > { %v2161_v17 = vsub.f32 %v2156_v41, %v2160_v44 }
 0xa22   : > { %v2162_v45 = vmul.f32 %v2161_v17, %v2161_v17 }
 0xa24   : > { %v2163_v46 = vsel %vm668_vm1, %v2162_v45, 0.0 }
 0xa25   : > { %2164 = vadd.xlane.f32.xlu0 %v2163_v46 }
 0xab2   : > { %v2165_v52 = vpop.xlane.xlu0 %2164 }
 0xab3   : > { %v2166_v53 = vmul.f32 0.03125, %v2165_v52 }
 0xab5   : > { %v2167_v54 = vadd.f32 1e-05, %v2166_v53 }
 0xab7   : > { %4372 = vrsqrt.f32 %v2167_v54 }
 0xac1   : > { %v4373_v55 = vpop.eup %4372 }
 0xac2   : > { %v2169_v56 = vmul.f32 %v4373_v55, %v2161_v17 }
 0xac4   : > { %v2170_v57 = vmul.f32 %v3882_v13, %v2169_v56 }
 0xac6   : > { %v5182_v25 = vadd.f32 %v3883_v16, %v2170_v57 }
 0xac8   : > { %v2204_v59 = vpack.c.bf16 %v5182_v25, %v5182_v25 }
 0xaca   : > { %4141 = vmatmul.mubr.msk.bf16.vlgmr.msra.gmra.mrb[24].mxu0 %vm668_vm1, %v2204_v59  ;;  %4157 = vmatmul.mubr.msk.bf16.vlgmr.msra.gmra.mrb[32].mxu1 %vm668_vm1, %v2204_v59 }
 0xacb   : > { %4145 = vmatpush3.bf16.msra.mxu0 %v4344_v58  ;;  %4148 = vmatprep.mubr.msk.bf16.mxu0 %vm4592_vm0, %v4591_v0 }
 0xacc   : > { %4146 = vmatprep.subr.bf16.mxu0 %v4591_v0  ;;  %4168 = vmatprep.mubr.msk.bf16.mxu1 %vm4592_vm0, %v4591_v0 }
 0xacf   : > { %4147 = vmatpush3.bf16.msra.mxu0 %v4345_v26 }
 0xad0   : > { %4160 = vmatprep.subr.bf16.mxu0 %v4591_v0 }
 0xad2   : > { %4149 = vmatmul.mubr.msk.bf16.vlgmr.msra.gmra.mrb[28].mxu0 %vm668_vm1, %v2204_v59 }
 0xad3   : > { %4162 = vmatprep.mubr.msk.bf16.mxu0 %vm4592_vm0, %v4591_v0 }
 0xb9d   : > { %v2260_v60 = vpop.f32.mrb[24].mxu0  ;;  %v5203_v61 = vpop.f32.mrb[32].mxu1 }
 0xb9e   : > { %v4142_v62 = vpop.f32.mrb[25].mxu0  ;;  %v4158_v63 = vpop.f32.mrb[33].mxu1  ;;  %v2261_v8 = vadd.f32 %v3912_v5, %v2260_v60 }
 0xb9f   : > { %v2263_v1 = vpop.f32.mrb[26].mxu0  ;;  %v2382_v2 = vpop.f32.mrb[34].mxu1 }
 0xba0   : > { %v4143_v3 = vpop.f32.mrb[27].mxu0  ;;  %v4159_v4 = vpop.f32.mrb[35].mxu1  ;;  %v2266_v12 = vmul.f32 0.35355338, %v2261_v8 }
 0xba2   : > { %v2267_v16 = vpack.c.bf16 %v2266_v12, %v2266_v12 }
 0xba4   : > { %v2399_v33 = vrot.slane %v2267_v16, %v4947_v36 }
 0xba5   : > { %v2320_v7 = vpop.f32.mrb[28].mxu0 }
 0xba6   : > { %v2321_v9 = vadd.f32 %v3916_v6, %v2320_v7  ;;  %v4150_v10 = vpop.f32.mrb[29].mxu0 }
 0xba7   : > { %v2323_v11 = vpop.f32.mrb[30].mxu0 }
 0xba8   : > { %v2326_v13 = vpack.c.bf16 %v2321_v9, %v2321_v9  ;;  %v4151_v14 = vpop.f32.mrb[31].mxu0 }
 0xbaa   : > { %2557 = vrot.lane.b32.xlu0 %v2326_v13, %s5546_s1  ;;  %2555 = vrot.lane.b32.xlu1 %v2326_v13, %s5547_s18  ;;  %v2567_v20 = vrot.slane %v2326_v13, %v4947_v36 }
 0xbae   : > { %2389 = vrot.lane.b32.xlu0 %v2267_v16, %s5546_s1  ;;  %2559 = vrot.lane.b32.xlu1 %v2326_v13, %s5548_s24 }
 0xbb2   : > { %2387 = vrot.lane.b32.xlu1 %v2267_v16, %s5547_s18 }
 0xbb6   : > { %2391 = vrot.lane.b32.xlu1 %v2267_v16, %s5548_s24 }
 0xc1c   : > { %v2558_v18 = vpop.permute.xlu0 %2557  ;;  %v2556_v19 = vpop.permute.xlu1 %2555 }
 0xc1d   : > { %v2575_v21 = vrot.slane %v2558_v18, %v4947_v36  ;;  %v2601_v32 = vrot.slane %v2556_v19, %v4947_v36 }
 0xc1f   : > { %v2576_v22 = vcombine.low %v2567_v20, %v2575_v21  ;;  %v2577_v23 = vcombine.high %v2567_v20, %v2575_v21 }
 0xc20   : > { %v2390_v24 = vpop.permute.xlu0 %2389  ;;  %v2560_v27 = vpop.permute.xlu1 %2559 }
 0xc21   : > { %v2584_v28 = vrot.slane %v2576_v22, %v4950_v40  ;;  %v2591_v29 = vrot.slane %v2577_v23, %v4950_v40  ;;  %v2407_v30 = vrot.slane %v2390_v24, %v4947_v36  ;;  %v2609_v31 = vrot.slane %v2560_v27, %v4947_v36 }
 0xc23   : > { %v2592_v34 = vcombine.high %v2584_v28, %v4598_v50  ;;  %v2593_v35 = vcombine.high %v2591_v29, %v4598_v50  ;;  %v2408_v37 = vcombine.low %v2399_v33, %v2407_v30  ;;  %v2409_v38 = vcombine.high %v2399_v33, %v2407_v30 }
 0xc24   : > { %v2610_v39 = vcombine.low %v2601_v32, %v2609_v31  ;;  %v2611_v41 = vcombine.high %v2601_v32, %v2609_v31  ;;  %v2388_v15 = vpop.permute.xlu1 %2387  ;;  %v2632_v45 = vshrl.u32 %v2584_v28, 16  ;;  %v2648_v47 = vshrl.u32 %v2591_v29, 16 }
 0xc25   : > { %v2416_v43 = vrot.slane %v2408_v37, %v4950_v40  ;;  %v2640_v46 = vshrl.u32 %v2592_v34, 16  ;;  %v2656_v48 = vshrl.u32 %v2593_v35, 16  ;;  %v2423_v49 = vrot.slane %v2409_v38, %v4950_v40 }
 0xc26   : > { %v2618_v44 = vrot.slane %v2610_v39, %v4950_v40  ;;  %v2625_v17 = vrot.slane %v2611_v41, %v4950_v40  ;;  %v2433_v59 = vrot.slane %v2388_v15, %v4947_v36 }
 0xc27   : > { %v2424_v56 = vcombine.high %v2416_v43, %v4598_v50  ;;  %v2425_v5 = vcombine.high %v2423_v49, %v4598_v50  ;;  %v2464_v11 = vshrl.u32 %v2416_v43, 16  ;;  %v2480_v18 = vshrl.u32 %v2423_v49, 16 }
 0xc28   : > { %v2626_v51 = vcombine.high %v2618_v44, %v4598_v50  ;;  %v2627_v52 = vcombine.high %v2625_v17, %v4598_v50  ;;  %v2630_v53 = vpack.i.b16 %v2618_v44, %v2584_v28  ;;  %v2633_v54 = vshrl.u32 %v2618_v44, 16  ;;  %v2392_v55 = vpop.permute.xlu1 %2391 }
 0xc29   : > { %v2646_v57 = vpack.i.b16 %v2625_v17, %v2591_v29  ;;  %v2649_v58 = vshrl.u32 %v2625_v17, 16  ;;  %v2441_v4 = vrot.slane %v2392_v55, %v4947_v36  ;;  %v2472_v16 = vshrl.u32 %v2424_v56, 16 }
 0xc2a   : > { %v2634_v26 = vpack.i.b16 %v2633_v54, %v2632_v45  ;;  %v2638_v60 = vpack.i.b16 %v2626_v51, %v2592_v34  ;;  %v2641_v62 = vshrl.u32 %v2626_v51, 16  ;;  %v2654_v63 = vpack.i.b16 %v2627_v52, %v2593_v35 }
 0xc2b   : > { %v2650_v1 = vpack.i.b16 %v2649_v58, %v2648_v47  ;;  %v2657_v2 = vshrl.u32 %v2627_v52, 16  ;;  %v2660_v3 = vcombine.low %v2630_v53, %v2646_v57  ;;  %v2442_v10 = vcombine.low %v2433_v59, %v2441_v4 }
 0xc2c   : > { %v2642_v6 = vpack.i.b16 %v2641_v62, %v2640_v46  ;;  %v2668_v8 = vcombine.low %v2638_v60, %v2654_v63  ;;  %v2443_v13 = vcombine.high %v2433_v59, %v2441_v4  ;;  %v2488_v21 = vshrl.u32 %v2425_v5, 16 }
 0xc2d   : > { %v2658_v7 = vpack.i.b16 %v2657_v2, %v2656_v48  ;;  %v2685_v9 = vcombine.low %v2634_v26, %v2650_v1  ;;  %v2667_v12 = vrot.slane %v2660_v3, %v4947_v36  ;;  %v2450_v20 = vrot.slane %v2442_v10, %v4950_v40 }
 0xc2e   : > { %v2675_v14 = vrot.slane %v2668_v8, %v4947_v36  ;;  %v2457_v22 = vrot.slane %v2443_v13, %v4950_v40 }
 0xc2f   : > { %v2693_v19 = vcombine.low %v2642_v6, %v2658_v7  ;;  %v2692_v24 = vrot.slane %v2685_v9, %v4947_v36  ;;  %v2458_v27 = vcombine.high %v2450_v20, %v4598_v50  ;;  %v2462_v28 = vpack.i.b16 %v2450_v20, %v2416_v43 }
 0xc30   : > { %v2676_v23 = vcombine.low %v2667_v12, %v2675_v14  ;;  %v2465_v29 = vshrl.u32 %v2450_v20, 16  ;;  %v2459_v31 = vcombine.high %v2457_v22, %v4598_v50  ;;  %v2478_v32 = vpack.i.b16 %v2457_v22, %v2423_v49 }
 0xc31   : > { %v2700_v30 = vrot.slane %v2693_v19, %v4947_v36  ;;  %v2481_v33 = vshrl.u32 %v2457_v22, 16  ;;  %v2470_v37 = vpack.i.b16 %v2458_v27, %v2424_v56  ;;  %v2473_v38 = vshrl.u32 %v2458_v27, 16 }
 0xc32   : > { %v2683_v34 = vrot.slane %v2676_v23, %v4950_v40  ;;  %v2466_v35 = vpack.i.b16 %v2465_v29, %v2464_v11  ;;  %v2486_v15 = vpack.i.b16 %v2459_v31, %v2425_v5  ;;  %v2489_v44 = vshrl.u32 %v2459_v31, 16 }
 0xc33   : > { %v2701_v39 = vcombine.low %v2692_v24, %v2700_v30  ;;  %v2482_v41 = vpack.i.b16 %v2481_v33, %v2480_v18  ;;  %v2492_v17 = vcombine.low %v2462_v28, %v2478_v32  ;;  %v2474_v45 = vpack.i.b16 %v2473_v38, %v2472_v16  ;;  %v4394_v38 = vld [vmem:[%s5016_s29] ss:$0 sm:$0xff]  ;;  %s5549_s29 = smov 16  }
 0xc34   : > { %v2490_v46 = vpack.i.b16 %v2489_v44, %v2488_v21  ;;  %v2500_v47 = vcombine.low %v2470_v37, %v2486_v15  ;;  %v2713_v52 = vshrl.u32 %v2683_v34, 16  ;;  %v2684_v62 = vcombine.high %v2683_v34, %v4598_v50 }
 0xc35   : > { %v2708_v43 = vrot.slane %v2701_v39, %v4950_v40  ;;  %v2517_v48 = vcombine.low %v2466_v35, %v2482_v41  ;;  %v2499_v53 = vrot.slane %v2492_v17, %v4947_v36 }
 0xc36   : > { %v2507_v54 = vrot.slane %v2500_v47, %v4947_v36  ;;  %v2525_v55 = vcombine.low %v2474_v45, %v2490_v46  ;;  %v2719_v6 = vshrl.u32 %v2684_v62, 16 }
 0xc37   : > { %v2712_v51 = vpack.i.b16 %v2708_v43, %v2683_v34  ;;  %v2714_v49 = vshrl.u32 %v2708_v43, 16  ;;  %v2709_v56 = vcombine.high %v2708_v43, %v4598_v50  ;;  %v2524_v26 = vrot.slane %v2517_v48, %v4947_v36  ;;  %v3920_v48 = vld [vmem:[%s5474_s8 + $0x1] ss:$0 sm:$0xff] }
 0xc38   : > { %v2508_v59 = vcombine.low %v2499_v53, %v2507_v54  ;;  %v2532_v60 = vrot.slane %v2525_v55, %v4947_v36 }
 0xc39   : > { %v2894_v57 = vsel %vm1342_vm2, %v2712_v51, 0  ;;  %v2715_v58 = vpack.i.b16 %v2714_v49, %v2713_v52  ;;  %v2720_v3 = vshrl.u32 %v2709_v56, 16  ;;  %v2718_v5 = vpack.i.b16 %v2709_v56, %v2684_v62 }
 0xc3a   : > { %4161 = vmatpush3.bf16.xpose.msra.mxu0 %v2894_v57  ;;  %v2533_v1 = vcombine.low %v2524_v26, %v2532_v60  ;;  %v2515_v2 = vrot.slane %v2508_v59, %v4950_v40  ;;  %v2380_v52 = vadd.f32 %v3920_v48, %v5203_v61 }
 0xc3b   : > { %v2940_v63 = vsel %vm1342_vm2, %v2715_v58, 0  ;;  %4172 = vmatprep.subr.bf16.mxu0 %v4591_v0  ;;  %v2721_v10 = vpack.i.b16 %v2720_v3, %v2719_v6  ;;  %v2986_v11 = vsel %vm1342_vm2, %v2718_v5, 0 }
 0xc3c   : > { %4167 = vmatpush3.bf16.xpose.msra.mxu1 %v2940_v63  ;;  %v2540_v4 = vrot.slane %v2533_v1, %v4950_v40  ;;  %v2545_v7 = vshrl.u32 %v2515_v2, 16  ;;  %v2516_v16 = vcombine.high %v2515_v2, %v4598_v50  ;;  %v2385_v49 = vpack.c.bf16 %v2380_v52, %v2380_v52 }
 0xc3d   : > { %4178 = vmatprep.subr.bf16.mxu1 %v4591_v0  ;;  %v3032_v14 = vsel %vm1342_vm2, %v2721_v10, 0 }
 0xc3e   : > { %v2544_v8 = vpack.i.b16 %v2540_v4, %v2515_v2  ;;  %v2546_v9 = vshrl.u32 %v2540_v4, 16  ;;  %v2541_v13 = vcombine.high %v2540_v4, %v4598_v50  ;;  %v2551_v20 = vshrl.u32 %v2516_v16, 16 }
 0xc40   : > { %v2547_v12 = vpack.i.b16 %v2546_v9, %v2545_v7  ;;  %v2552_v18 = vshrl.u32 %v2541_v13, 16  ;;  %v2550_v19 = vpack.i.b16 %v2541_v13, %v2516_v16 }
 0xc41   : > { %4163 = vmatmul.mubr.msk.bf16.vlgmr.msra.gmra.mrb[32].mxu0 %vm1342_vm2, %v2544_v8 }
 0xc42   : > { %4173 = vmatpush3.bf16.xpose.msra.mxu0 %v2986_v11  ;;  %4174 = vmatprep.mubr.msk.bf16.mxu0 %vm4592_vm0, %v4591_v0  ;;  %v2553_v21 = vpack.i.b16 %v2552_v18, %v2551_v20  ;;  %v2735_v20 = vrot.slane %v2385_v49, %v4947_v36 }
 0xc43   : > { %4169 = vmatmul.mubr.msk.bf16.vlgmr.msra.gmra.mrb[36].mxu1 %vm1342_vm2, %v2547_v12  ;;  %4184 = vmatprep.subr.bf16.mxu0 %v4591_v0 }
 0xc44   : > { %4179 = vmatpush3.bf16.xpose.msra.mxu1 %v3032_v14  ;;  %4180 = vmatprep.mubr.msk.bf16.mxu1 %vm4592_vm0, %v4591_v0 }
 0xc45   : > { %4190 = vmatprep.subr.bf16.mxu1 %v4591_v0 }
 0xc49   : > { %4175 = vmatmul.mubr.msk.bf16.vlgmr.msra.gmra.mrb[36].mxu0 %vm1342_vm2, %v2550_v19 }
 0xc4a   : > { %4186 = vmatprep.mubr.msk.bf16.mxu0 %vm4592_vm0, %v4591_v0 }
 0xc4b   : > { %4181 = vmatmul.mubr.msk.bf16.vlgmr.msra.gmra.mrb[40].mxu1 %vm1342_vm2, %v2553_v21 }
 0xc4c   : > { %4192 = vmatprep.mubr.msk.bf16.mxu1 %vm4592_vm0, %v4591_v0 }
 0xd14   : > { %v2930_v22 = vpop.f32.mrb[32].mxu0 }
 0xd15   : > { %v2931_v23 = vadd.f32 %v5019_v42, %v2930_v22  ;;  %v4164_v24 = vpop.f32.mrb[33].mxu0 }
 0xd16   : > { %v2933_v27 = vpop.f32.mrb[34].mxu0  ;;  %v2976_v28 = vpop.f32.mrb[36].mxu1 }
 0xd17   : > { %v2977_v29 = vadd.f32 %v5019_v42, %v2976_v28  ;;  %v4165_v30 = vpop.f32.mrb[35].mxu0  ;;  %v4170_v31 = vpop.f32.mrb[37].mxu1  ;;  %v3074_v32 = vsel %vm1342_vm2, %v2931_v23, -inf }
 0xd18   : > { %3075 = vmax.xlane.f32.xlu0 %v3074_v32  ;;  %v2979_v33 = vpop.f32.mrb[38].mxu1 }
 0xd19   : > { %v4171_v34 = vpop.f32.mrb[39].mxu1  ;;  %v3077_v35 = vsel %vm1342_vm2, %v2977_v29, -inf }
 0xd1a   : > { %3078 = vmax.xlane.f32.xlu1 %v3077_v35 }
 0xd1c   : > { %v3022_v37 = vpop.f32.mrb[36].mxu0 }
 0xd1d   : > { %v3023_v39 = vadd.f32 %v4394_v38, %v3022_v37  ;;  %v4176_v41 = vpop.f32.mrb[37].mxu0 }
 0xd1e   : > { %v3025_v15 = vpop.f32.mrb[38].mxu0  ;;  %v3068_v44 = vpop.f32.mrb[40].mxu1 }
 0xd1f   : > { %v3069_v17 = vadd.f32 %v4394_v38, %v3068_v44  ;;  %v4177_v45 = vpop.f32.mrb[39].mxu0  ;;  %v4182_v43 = vpop.f32.mrb[41].mxu1  ;;  %v3080_v42 = vsel %vm1342_vm2, %v3023_v39, -inf }
 0xd20   : > { %3081 = vmax.xlane.f32.xlu0 %v3080_v42  ;;  %v3071_v46 = vpop.f32.mrb[42].mxu1 }
 0xd21   : > { %v4183_v47 = vpop.f32.mrb[43].mxu1  ;;  %v3083_v51 = vsel %vm1342_vm2, %v3069_v17, -inf }
 0xd24   : > { %3084 = vmax.xlane.f32.xlu0 %v3083_v51 }
 0xd2b   : > { %2723 = vrot.lane.b32.xlu1 %v2385_v49, %s5547_s18  ;;  %s616_s18 = scalar_lea.vmem [#allocation10], %s3854_s22 }
 0xda5   : > { %v3076_v53 = vpop.xlane.xlu0 %3075 }
 0xda6   : > { %v3086_v54 = vsub.f32 %v2931_v23, %v3076_v53 }
 0xda7   : > { %v3079_v55 = vpop.xlane.xlu1 %3078 }
 0xda8   : > { %v3090_v56 = vmul.f32 1.442695, %v3086_v54  ;;  %v3087_v57 = vsub.f32 %v2977_v29, %v3079_v55 }
 0xdaa   : > { %4374 = vpow2.f32 %v3090_v56  ;;  %v3092_v58 = vmul.f32 1.442695, %v3087_v57 }
 0xdab   : > { %v2724_v9 = vpop.permute.xlu1 %2723 }
 0xdac   : > { %4376 = vpow2.f32 %v3092_v58  ;;  %v2769_v13 = vrot.slane %v2724_v9, %v4947_v36 }
 0xdad   : > { %v3082_v62 = vpop.xlane.xlu0 %3081 }
 0xdae   : > { %v3088_v1 = vsub.f32 %v3023_v39, %v3082_v62 }
 0xdb0   : > { %v3094_v3 = vmul.f32 1.442695, %v3088_v1 }
 0xdb1   : > { %v3085_v63 = vpop.xlane.xlu0 %3084 }
 0xdb2   : > { %v3089_v2 = vsub.f32 %v3069_v17, %v3085_v63  ;;  %4378 = vpow2.f32 %v3094_v3 }
 0xdb4   : > { %v5289_v59 = vpop.eup %4374  ;;  %v3096_v4 = vmul.f32 1.442695, %v3089_v2 }
 0xdb5   : > { %v3098_v26 = vsel %vm1342_vm2, %v5289_v59, 0.0 }
 0xdb6   : > { %v5293_v60 = vpop.eup %4376  ;;  %3099 = vadd.xlane.f32.xlu1 %v3098_v26  ;;  %4380 = vpow2.f32 %v3096_v4 }
 0xdb7   : > { %v3101_v61 = vsel %vm1342_vm2, %v5293_v60, 0.0 }
 0xdb8   : > { %3102 = vadd.xlane.f32.xlu0 %v3101_v61 }
 0xdbc   : > { %v5299_v5 = vpop.eup %4378 }
 0xdbd   : > { %v3104_v8 = vsel %vm1342_vm2, %v5299_v5, 0.0 }
 0xdc0   : > { %v5301_v6 = vpop.eup %4380 }
 0xdc1   : > { %v3107_v7 = vsel %vm1342_vm2, %v5301_v6, 0.0 }
 0xdc7   : > { %2727 = vrot.lane.b32.xlu1 %v2385_v49, %s5548_s24  ;;  %s3733_s24 = sshll.u32 %s616_s18, 4  ;;  %s5423_s24 = int_to_ptr.vmem [resolvable:$true] %s3733_s24 }
 0xdce   : > { %2725 = vrot.lane.b32.xlu0 %v2385_v49, %s5546_s1  ;;  %s3961_s1 = sshll.u32 %s4714_s28, 7  ;;  %s4602_s28 = smov [#allocation10]  }
 0xdcf   : > { %s4513_s22 = sshll.u32 %s4602_s28, 4  ;;  %s4514_s22 = int_to_ptr.vmem [resolvable:$false] %s4513_s22 }
 0xdd0   : > { %s4515_s2 = scalar_lea.vmem %s4514_s22, 256  ;;  %p4516_p7 = scmp.lt.s32.totalorder %s5423_s24, %s4514_s22 }
 0xdeb   : > { %3105 = vadd.xlane.f32.xlu1 %v3104_v8 }
 0xded   : > { %3108 = vadd.xlane.f32.xlu0 %v3107_v7 }
 0xe43   : > { %v3100_v10 = vpop.xlane.xlu1 %3099 }
 0xe44   : > { %4382 = vrcp.f32 %v3100_v10 }
 0xe45   : > { %v3103_v11 = vpop.xlane.xlu0 %3102 }
 0xe46   : > { %4384 = vrcp.f32 %v3103_v11 }
 0xe47   : > { %v2728_v12 = vpop.permute.xlu1 %2727 }
 0xe48   : > { %v2777_v14 = vrot.slane %v2728_v12, %v4947_v36 }
 0xe49   : > { %v2726_v16 = vpop.permute.xlu0 %2725 }
 0xe4a   : > { %v2778_v18 = vcombine.low %v2769_v13, %v2777_v14  ;;  %v2779_v19 = vcombine.high %v2769_v13, %v2777_v14  ;;  %v2743_v21 = vrot.slane %v2726_v16, %v4947_v36 }
 0xe4c   : > { %v2786_v22 = vrot.slane %v2778_v18, %v4950_v40  ;;  %v2793_v23 = vrot.slane %v2779_v19, %v4950_v40  ;;  %v2744_v24 = vcombine.low %v2735_v20, %v2743_v21  ;;  %v2745_v27 = vcombine.high %v2735_v20, %v2743_v21 }
 0xe4e   : > { %v2794_v28 = vcombine.high %v2786_v22, %v4598_v50  ;;  %v2795_v29 = vcombine.high %v2793_v23, %v4598_v50  ;;  %v2752_v30 = vrot.slane %v2744_v24, %v4950_v40  ;;  %v2759_v31 = vrot.slane %v2745_v27, %v4950_v40  ;;  %v4383_v57 = vpop.eup %4382 }
 0xe4f   : > { %v2801_v32 = vshrl.u32 %v2786_v22, 16  ;;  %v2817_v33 = vshrl.u32 %v2793_v23, 16  ;;  %v3114_v4 = vmul.f32 %v4383_v57, %v5289_v59 }
 0xe50   : > { %v2809_v34 = vshrl.u32 %v2794_v28, 16  ;;  %v2760_v35 = vcombine.high %v2752_v30, %v4598_v50  ;;  %v2761_v37 = vcombine.high %v2759_v31, %v4598_v50  ;;  %v2798_v38 = vpack.i.b16 %v2786_v22, %v2752_v30  ;;  %v4385_v62 = vpop.eup %4384 }
 0xe51   : > { %v2825_v39 = vshrl.u32 %v2795_v29, 16  ;;  %v2800_v41 = vshrl.u32 %v2752_v30, 16  ;;  %v2814_v15 = vpack.i.b16 %v2793_v23, %v2759_v31  ;;  %v2816_v44 = vshrl.u32 %v2759_v31, 16 }
 0xe52   : > { %v2806_v17 = vpack.i.b16 %v2794_v28, %v2760_v35  ;;  %v2808_v45 = vshrl.u32 %v2760_v35, 16  ;;  %v2822_v43 = vpack.i.b16 %v2795_v29, %v2761_v37  ;;  %v2824_v42 = vshrl.u32 %v2761_v37, 16 }
 0xe53   : > { %v2802_v46 = vpack.i.b16 %v2801_v32, %v2800_v41  ;;  %v2818_v47 = vpack.i.b16 %v2817_v33, %v2816_v44  ;;  %v2828_v48 = vcombine.low %v2798_v38, %v2814_v15  ;;  %v3115_v11 = vmul.f32 %v4385_v62, %v5293_v60 }
 0xe54   : > { %v2810_v51 = vpack.i.b16 %v2809_v34, %v2808_v45  ;;  %v2826_v52 = vpack.i.b16 %v2825_v39, %v2824_v42  ;;  %v2836_v49 = vcombine.low %v2806_v17, %v2822_v43  ;;  %v3118_v20 = vpack.c.bf16 %v3114_v4, %v3114_v4 }
 0xe55   : > { %v2853_v53 = vcombine.low %v2802_v46, %v2818_v47  ;;  %v2835_v54 = vrot.slane %v2828_v48, %v4947_v36  ;;  %v3119_v21 = vpack.c.bf16 %v3115_v11, %v3115_v11 }
 0xe56   : > { %v2861_v55 = vcombine.low %v2810_v51, %v2826_v52  ;;  %v2843_v56 = vrot.slane %v2836_v49, %v4947_v36 }
 0xe57   : > { %v2860_v26 = vrot.slane %v2853_v53, %v4947_v36 }
 0xe58   : > { %v2844_v58 = vcombine.low %v2835_v54, %v2843_v56  ;;  %v2868_v61 = vrot.slane %v2861_v55, %v4947_v36 }
 0xe5a   : > { %v2851_v63 = vrot.slane %v2844_v58, %v4950_v40  ;;  %v2869_v1 = vcombine.low %v2860_v26, %v2868_v61  ;;  %v4346_v26 = vld [vmem:[#allocation7 + $0x10] sm:$0xff]  }
 0xe5c   : > { %v2876_v2 = vrot.slane %v2869_v1, %v4950_v40  ;;  %v2852_v3 = vcombine.high %v2851_v63, %v4598_v50  ;;  %v2881_v7 = vshrl.u32 %v2851_v63, 16 }
 0xe5e   : > { %v2880_v8 = vpack.i.b16 %v2876_v2, %v2851_v63  ;;  %v2882_v9 = vshrl.u32 %v2876_v2, 16  ;;  %v2877_v10 = vcombine.high %v2876_v2, %v4598_v50  ;;  %v2887_v12 = vshrl.u32 %v2852_v3, 16 }
 0xe60   : > { %v3126_v13 = vsel %vm1578_vm3, %v2880_v8, 0  ;;  %v2883_v14 = vpack.i.b16 %v2882_v9, %v2881_v7  ;;  %v2886_v16 = vpack.i.b16 %v2877_v10, %v2852_v3  ;;  %v2888_v18 = vshrl.u32 %v2877_v10, 16  ;;  %v4347_v7 = vld [vmem:[#allocation7 + $0x18] sm:$0xff]  }
 0xe61   : > { %4185 = vmatpush3.bf16.msra.mxu0 %v3126_v13 }
 0xe62   : > { %v3172_v19 = vsel %vm1578_vm3, %v2883_v14, 0  ;;  %4196 = vmatprep.subr.bf16.mxu0 %v4591_v0  ;;  %v2889_v59 = vpack.i.b16 %v2888_v18, %v2887_v12  ;;  %v3218_v50 = vsel %vm1578_vm3, %v2886_v16, 0 }
 0xe63   : > { %4191 = vmatpush3.bf16.msra.mxu1 %v3172_v19 }
 0xe64   : > { %4187 = vmatmul.mubr.msk.bf16.vlgmr.msra.gmra.mrb[40].mxu0 %vm1342_vm2, %v3118_v20  ;;  %4202 = vmatprep.subr.bf16.mxu1 %v4591_v0  ;;  %v3264_v60 = vsel %vm1578_vm3, %v2889_v59, 0 }
 0xe65   : > { %4197 = vmatpush3.bf16.msra.mxu0 %v3218_v50  ;;  %4198 = vmatprep.mubr.msk.bf16.mxu0 %vm4592_vm0, %v4591_v0 }
 0xe66   : > { %4193 = vmatmul.mubr.msk.bf16.vlgmr.msra.gmra.mrb[44].mxu1 %vm1342_vm2, %v3119_v21  ;;  %4208 = vmatprep.subr.bf16.mxu0 %v4591_v0 }
 0xe67   : > { %4203 = vmatpush3.bf16.msra.mxu1 %v3264_v60  ;;  %4204 = vmatprep.mubr.msk.bf16.mxu1 %vm4592_vm0, %v4591_v0 }
 0xe68   : > { %4216 = vmatprep.subr.bf16.mxu1 %v4591_v0 }
 0xe78   : > { %v3106_v22 = vpop.xlane.xlu1 %3105 }
 0xe79   : > { %4386 = vrcp.f32 %v3106_v22 }
 0xe7a   : > { %v3109_v23 = vpop.xlane.xlu0 %3108 }
 0xe7b   : > { %4388 = vrcp.f32 %v3109_v23 }
 0xe83   : > { %v4387_v24 = vpop.eup %4386 }
 0xe84   : > { %v3116_v27 = vmul.f32 %v4387_v24, %v5299_v5 }
 0xe85   : > { %v4389_v28 = vpop.eup %4388 }
 0xe86   : > { %v3117_v29 = vmul.f32 %v4389_v28, %v5301_v6  ;;  %v3120_v30 = vpack.c.bf16 %v3116_v27, %v3116_v27 }
 0xe88   : > { %4199 = vmatmul.mubr.msk.bf16.vlgmr.msra.gmra.mrb[44].mxu0 %vm1342_vm2, %v3120_v30  ;;  %v3121_v31 = vpack.c.bf16 %v3117_v29, %v3117_v29 }
 0xe89   : > { %4212 = vmatprep.mubr.msk.bf16.mxu0 %vm4592_vm0, %v4591_v0  ;;  %4209 = vmatpush3.bf16.msra.mxu0 %v4346_v26 }
 0xe8a   : > { %4205 = vmatmul.mubr.msk.bf16.vlgmr.msra.gmra.mrb[48].mxu1 %vm1342_vm2, %v3121_v31  ;;  %4210 = vmatprep.subr.bf16.mxu0 %v4591_v0  ;;  %v3934_v31 = vld [vmem:[%s5476_s10 + $0x1] ss:$0 sm:$0xff] }
 0xe8b   : > { %4220 = vmatprep.mubr.msk.bf16.mxu1 %vm4592_vm0, %v4591_v0 }
 0xe8d   : > { %4211 = vmatpush3.bf16.msra.mxu0 %v4347_v7 }
 0xe8e   : > { %4224 = vmatprep.subr.bf16.mxu0 %v4591_v0 }
 0xf37   : > { %v3162_v32 = vpop.f32.mrb[40].mxu0 }
 0xf38   : > { %v4188_v33 = vpop.f32.mrb[41].mxu0 }
 0xf39   : > { %v3165_v34 = vpop.f32.mrb[42].mxu0  ;;  %v3208_v35 = vpop.f32.mrb[44].mxu1 }
 0xf3a   : > { %v4189_v5 = vpop.f32.mrb[43].mxu0  ;;  %v4194_v37 = vpop.f32.mrb[45].mxu1 }
 0xf3b   : > { %v3211_v38 = vpop.f32.mrb[46].mxu1 }
 0xf3c   : > { %v4195_v6 = vpop.f32.mrb[47].mxu1 }
 0xf5b   : > { %v3254_v39 = vpop.f32.mrb[44].mxu0 }
 0xf5c   : > { %v3306_v41 = vcombine.low %v3162_v32, %v3254_v39  ;;  %v3307_v15 = vcombine.high %v3162_v32, %v3254_v39  ;;  %v4200_v44 = vpop.f32.mrb[45].mxu0 }
 0xf5d   : > { %v3257_v17 = vpop.f32.mrb[46].mxu0  ;;  %v3300_v45 = vpop.f32.mrb[48].mxu1 }
 0xf5e   : > { %v3322_v43 = vcombine.low %v3208_v35, %v3300_v45  ;;  %v3323_v42 = vcombine.high %v3208_v35, %v3300_v45  ;;  %v4201_v46 = vpop.f32.mrb[47].mxu0  ;;  %v4206_v47 = vpop.f32.mrb[49].mxu1  ;;  %v3314_v51 = vrot.slane %v3306_v41, %v4947_v36  ;;  %v3321_v52 = vrot.slane %v3307_v15, %v4947_v36  ;;  %v4348_v17 = vld [vmem:[#allocation8 + $0x10] sm:$0xff]   ;;  %v4349_v45 = vld [vmem:[#allocation8 + $0x18] sm:$0xff]  }
 0xf5f   : > { %v3303_v48 = vpop.f32.mrb[50].mxu1  ;;  %4217 = vmatpush3.bf16.msra.mxu1 %v4348_v17 }
 0xf60   : > { %v3330_v49 = vrot.slane %v3322_v43, %v4947_v36  ;;  %v3337_v53 = vrot.slane %v3323_v42, %v4947_v36  ;;  %v4207_v54 = vpop.f32.mrb[51].mxu1  ;;  %4218 = vmatprep.subr.bf16.mxu1 %v4591_v0  ;;  %v4351_v43 = vld [vmem:[%s5540_s11 + $0x28] sm:$0xff]  }
 0xf62   : > { %v3338_v55 = vcombine.low %v3314_v51, %v3330_v49  ;;  %v3339_v56 = vcombine.high %v3314_v51, %v3330_v49  ;;  %v3354_v57 = vcombine.low %v3321_v52, %v3337_v53  ;;  %v3355_v58 = vcombine.high %v3321_v52, %v3337_v53  ;;  %v3938_v51 = vld [vmem:[%s5541_s23 + $0x1] ss:$0 sm:$0xff] }
 0xf63   : > { %4219 = vmatpush3.bf16.msra.mxu1 %v4349_v45  ;;  %v3939_v49 = vld [vmem:[%s5542_s14 + $0x1] ss:$0 sm:$0xff] }
 0xf64   : > { %v3346_v61 = vrot.slane %v3338_v55, %v4950_v40  ;;  %v3353_v62 = vrot.slane %v3339_v56, %v4950_v40  ;;  %v3362_v63 = vrot.slane %v3354_v57, %v4950_v40  ;;  %v3369_v1 = vrot.slane %v3355_v58, %v4950_v40  ;;  %v4352_v56 = vld [vmem:[%s5540_s11 + $0x30] sm:$0xff]   ;;  %v4353_v57 = vld [vmem:[%s5540_s11 + $0x38] sm:$0xff]   ;;  %v3941_v58 = vld [vmem:[%s5544_s0 + $0x1] ss:$0 sm:$0xff]  ;;  %s4509_s0 = scalar_lea.vmem %s5423_s24, 128 }
 0xf65   : > { %p4510_p4 = scmp.ne.s32.totalorder %s5423_s24, %s4509_s0  ;;  %p4517_p10 = scmp.lt.s32.totalorder %s4515_s2, %s4509_s0 }
 0xf66   : > { %v3374_v2 = vcombine.low %v3346_v61, %v3353_v62  ;;  %v3932_v3 = vcombine.high %v3346_v61, %v3353_v62  ;;  %v3390_v4 = vcombine.low %v3362_v63, %v3369_v1  ;;  %v3933_v8 = vcombine.high %v3362_v63, %v3369_v1 }
 0xf67   : > { %p4511_p8 = pnand %p4510_p4, %p4831_p6  ;;  %p4518_p13 = por %p4517_p10, %p4516_p7 }
 0xf68   : > { %v3381_v9 = vrot.slane %v3374_v2, %v4947_v36  ;;  %v3389_v10 = vrot.slane %v3932_v3, %v4947_v36  ;;  %v3397_v11 = vrot.slane %v3390_v4, %v4947_v36  ;;  %v3405_v12 = vrot.slane %v3933_v8, %v4947_v36 }
 0xf69   : > { %p4512_p3 = pneg %p4511_p8 }
 0xf6a   : > { %v3407_v13 = vcombine.high %v3381_v9, %v3389_v10  ;;  %v3423_v14 = vcombine.high %v3397_v11, %v3405_v12  ;;  %v3406_v16 = vcombine.low %v3381_v9, %v3389_v10  ;;  %v3422_v18 = vcombine.low %v3397_v11, %v3405_v12 }
 0xf6b   : > { %p4519_p5 = pnand %p4518_p13, %p4512_p3 }
 0xf6c   : > { %v3421_v19 = vrot.slane %v3407_v13, %v4950_v40  ;;  %v3437_v20 = vrot.slane %v3423_v14, %v4950_v40  ;;  %v3414_v59 = vrot.slane %v3406_v16, %v4950_v40  ;;  %v3430_v50 = vrot.slane %v3422_v18, %v4950_v40 }
 0xf6e   : > { %v3440_v21 = vcombine.low %v3421_v19, %v3437_v20  ;;  %v3439_v60 = vcombine.high %v3414_v59, %v3430_v50  ;;  %v3441_v22 = vcombine.high %v3421_v19, %v3437_v20  ;;  %v3438_v23 = vcombine.low %v3414_v59, %v3430_v50 }
 0xf70   : > { %3447 = vrot.lane.b32.xlu1 %v3440_v21, %s5549_s29  ;;  %3443 = vrot.lane.b32.xlu0 %v3439_v60, %s5550_s20  ;;  %s5552_s29 = sld [smem:[#allocation26_spill]] }
 0xf74   : > { %3451 = vrot.lane.b32.xlu1 %v3441_v22, %s5551_s15  ;;  %s3720_s15 = scalar_lea.sflag [#allocation4], %s4876_s9 }
 0xf76   : > { %s5421_s20 = scalar_lea.hbm %s5552_s29, %s3961_s1 }
 0xfe2   : > { %v3448_v36 = vpop.permute.xlu1 %3447  ;;  %v3444_v24 = vpop.permute.xlu0 %3443 }
 0xfe3   : > { %v3454_v27 = vsel %vm1342_vm2, %v3438_v23, %v3444_v24 }
 0xfe4   : > { %v3455_v29 = vsel %vm1909_vm4, %v3454_v27, %v3448_v36 }
 0xfe6   : > { %v3452_v28 = vpop.permute.xlu1 %3451 }
 0xfe7   : > { %v3456_v30 = vsel %vm1911_vm5, %v3455_v29, %v3452_v28 }
 0xfe8   : > { %v3457_v40 = vpack.c.bf16 %v3456_v30, %v3456_v30 }
 0xfea   : > { %4213 = vmatmul.mubr.msk.bf16.vlgmr.msra.gmra.mrb[48].mxu0 %vm668_vm1, %v3457_v40 }
 0xfeb   : > { %4232 = vmatprep.mubr.msk.bf16.mxu0 %vm4592_vm0, %v4591_v0 }
0x10bd   : > { %v3513_v32 = vpop.f32.mrb[48].mxu0 }
0x10be   : > { %v3514_v33 = vadd.f32 %v3934_v31, %v3513_v32  ;;  %v4214_v34 = vpop.f32.mrb[49].mxu0 }
0x10bf   : > { %v3516_v35 = vpop.f32.mrb[50].mxu0 }
0x10c0   : > { %v4215_v5 = vpop.f32.mrb[51].mxu0  ;;  %v3519_v37 = vadd.f32 %v3514_v33, %v5182_v25  ;;  %v4350_v25 = vld [vmem:[%s5540_s11 + $0x20] sm:$0xff]  }
0x10c1   : > { %4225 = vmatpush3.bf16.msra.mxu0 %v4350_v25 }
0x10c2   : > { %v3520_v38 = vsel %vm668_vm1, %v3519_v37, 0.0  ;;  %4226 = vmatprep.subr.bf16.mxu0 %v4591_v0 }
0x10c3   : > { %3521 = vadd.xlane.f32.xlu0 %v3520_v38 }
0x10c5   : > { %4227 = vmatpush3.bf16.msra.mxu0 %v4351_v43 }
0x10c6   : > { %4228 = vmatprep.subr.bf16.mxu0 %v4591_v0 }
0x10c9   : > { %4229 = vmatpush3.bf16.msra.mxu0 %v4352_v56 }
0x10ca   : > { %4230 = vmatprep.subr.bf16.mxu0 %v4591_v0  ;;  %v3954_v0 = vld [vmem:[%s5545_s30 + $0x1] ss:$0 sm:$0xff] }
0x10cd   : > { %4231 = vmatpush3.bf16.msra.mxu0 %v4353_v57 }
0x1150   : > { %v3522_v6 = vpop.xlane.xlu0 %3521 }
0x1151   : > { %v3523_v39 = vmul.f32 0.03125, %v3522_v6 }
0x1153   : > { %v3524_v41 = vsub.f32 %v3519_v37, %v3523_v39 }
0x1155   : > { %v3525_v15 = vmul.f32 %v3524_v41, %v3524_v41 }
0x1157   : > { %v3526_v44 = vsel %vm668_vm1, %v3525_v15, 0.0 }
0x1158   : > { %3527 = vadd.xlane.f32.xlu1 %v3526_v44 }
0x11e5   : > { %v3528_v42 = vpop.xlane.xlu1 %3527 }
0x11e6   : > { %v3529_v46 = vmul.f32 0.03125, %v3528_v42 }
0x11e8   : > { %v3530_v47 = vadd.f32 1e-05, %v3529_v46 }
0x11ea   : > { %4390 = vrsqrt.f32 %v3530_v47 }
0x11f4   : > { %v4391_v48 = vpop.eup %4390 }
0x11f5   : > { %v3532_v52 = vmul.f32 %v4391_v48, %v3524_v41 }
0x11f7   : > { %v3539_v53 = vmul.f32 %v3938_v51, %v3532_v52 }
0x11f9   : > { %v3546_v54 = vadd.f32 %v3939_v49, %v3539_v53 }
0x11fb   : > { %v3547_v55 = vpack.c.bf16 %v3546_v54, %v3546_v54 }
0x11fd   : > { %4221 = vmatmul.mubr.msk.bf16.vlgmr.msra.gmra.mrb[52].mxu1 %vm668_vm1, %v3547_v55 }
0x12d0   : > { %v3610_v26 = vpop.f32.mrb[52].mxu1 }
0x12d1   : > { %v3611_v61 = vadd.f32 %v3941_v58, %v3610_v26  ;;  %v4222_v62 = vpop.f32.mrb[53].mxu1 }
0x12d2   : > { %v3613_v63 = vpop.f32.mrb[54].mxu1 }
0x12d3   : > { %v3616_v1 = vmax.f32 %v3611_v61, 0.0  ;;  %v4223_v2 = vpop.f32.mrb[55].mxu1 }
0x12d5   : > { %v3617_v3 = vpack.c.bf16 %v3616_v1, %v3616_v1 }
0x12d7   : > { %4233 = vmatmul.mubr.msk.bf16.vlgmr.msra.gmra.mrb[52].mxu0 %vm2112_vm6, %v3617_v3 }
0x13aa   : > { %v3696_v4 = vpop.f32.mrb[52].mxu0 }
0x13ab   : > { %v3697_v8 = vadd.f32 %v3954_v0, %v3696_v4  ;;  %v4234_v7 = vpop.f32.mrb[53].mxu0 }
0x13ac   : > { %v3699_v9 = vpop.f32.mrb[54].mxu0 }
0x13ad   : > { %v4235_v10 = vpop.f32.mrb[55].mxu0  ;;  %v3702_v11 = vadd.f32 %v3697_v8, %v3546_v54 }
0x13af   : > { %v3703_v12 = vsel %vm668_vm1, %v3702_v11, 0.0 }
0x13b0   : > { %3704 = vadd.xlane.f32.xlu0 %v3703_v12 }
0x143d   : > { %v3705_v13 = vpop.xlane.xlu0 %3704 }
0x143e   : > { %v3706_v14 = vmul.f32 0.03125, %v3705_v13 }
0x1440   : > { %v3707_v16 = vsub.f32 %v3702_v11, %v3706_v14 }
0x1442   : > { %v3708_v18 = vmul.f32 %v3707_v16, %v3707_v16 }
0x1444   : > { %v3709_v19 = vsel %vm668_vm1, %v3708_v18, 0.0 }
0x1445   : > { %3710 = vadd.xlane.f32.xlu0 %v3709_v19 }
0x14d2   : > { %v3711_v20 = vpop.xlane.xlu0 %3710 }
0x14d3   : > { %v3712_v59 = vmul.f32 0.03125, %v3711_v20 }
0x14d5   : > { %v3713_v50 = vadd.f32 1e-05, %v3712_v59 }
0x14d7   : > { %4392 = vrsqrt.f32 %v3713_v50 }
0x14e1   : > { %v4393_v21 = vpop.eup %4392 }
0x14e2   : > { %v3715_v60 = vmul.f32 %v4393_v21, %v3707_v16 }
0x14e4   : > { %v3716_v22 = vmul.f32 %v3938_v51, %v3715_v60 }
0x14e6   : > { %v3717_v23 = vadd.f32 %v3939_v49, %v3716_v22 }
0x14e8   : > { %3718 = vst.msk [vmem:[%s616_s18] sm:$0xff] %vm668_vm1, %v3717_v23 }
0x14e9   : > { %4522 = shalt.err (!%p4519_p5)
}
0x14ea   : > { %s4523_s9 = scalar_lea.hbm %s5421_s20, 128  ;;  %s4527_s21 = scalar_lea.hbm %s5552_s29, 256 }
0x14eb   : > { %p4524_p0 = scmp.ne.s32.totalorder %s5421_s20, %s4523_s9  ;;  %p4528_p12 = scmp.lt.u32.totalorder %s5421_s20, %s5552_s29 }
0x14ec   : > { %p4529_p2 = scmp.lt.u32.totalorder %s4527_s21, %s4523_s9  ;;  %p4531_p4 = scmp.lt.u32.totalorder %s4523_s9, %s5421_s20 }
0x14ed   : > { %p4525_p9 = pnand %p4524_p0, %p4831_p6 }
0x14ee   : > { %p4530_p1 = por %p4529_p2, %p4528_p12 }
0x14ef   : > { %p4526_p11 = pneg %p4525_p9 }
0x14f0   : > { %p4532_p8 = por %p4531_p4, %p4530_p1 }
0x14f2   : > { %p4533_p3 = pnand %p4532_p8, %p4526_p11 }
0x14f4   : > { %4536 = shalt.err (!%p4533_p3)
}
0x14f5   : > { %4250 = dma.vmem_to_hbm [thread:$0]  (%p4831_p6), %s5423_s24, 128, %s5421_s20, %s3720_s15  }
0x14f6 PF: > { %s5553_s2 = sld [smem:[#allocation15_spill]]  ;;  %s5554_s0 = sld [smem:[#allocation16_spill]] }
0x14f7   : > { %p5556_p10 = scmp.ge.s32.totalorder %s4583_s27, 2 }
0x14fc   : > { %s3745_s22 = sand.u32 1, %s5553_s2   ;;  %p5555_p7 = scmp.ne.s32.totalorder %s5554_s0, 0 }
0x14fd   : > { %s3746_s1 = scalar_lea.sflag [#allocation4], %s3745_s22 }
0x14fe   : > { %p4267_p13 = pnand %p5556_p10, %p5555_p7 }
0x1500   : > { %4566 = dma.done.wait (!%p4267_p13), %s3746_s1, 128  }
0x1501   : > { %4568 = vsyncadd (!%p4267_p13), %s3746_s1, 4294967168  ;;  %p32_p5 = scmp.ge.s32.totalorder %s4817_s19, 4   ;;  %s5557_s24 = smov %s4575_s25 }
0x1502   : > { %s5558_s25 = smov %s4579_s26  ;;  %s5559_s26 = smov %s4827_s12 }
0x1503   : > { %s5560_s27 = smov %s4817_s19  ;;  %34 = sbr.rel (!%p32_p5) target bundleno = 18 (0x12), region = 162 }
0x150a   :  { %3751 = vsyncpa [#allocation3], 1 }
0x150b   :  { %3753 = vsyncpa [#allocation3 + $0x1], 1 }
0x150c   :  { %3754 = vsyncpa [#allocation6], 1 }
0x150d   :  { %3755 = vsyncpa [#allocation9], 1 }
0x150e   :  { %3756 = vsyncpa [#allocation4], 1 }
0x150f   :  { %3758 = vsyncpa [#allocation4 + $0x1], 1 }

</bundles_post_ra>
